<compile_context>
chip_gen: v5e
topology: v5e:2x2
jax: 0.10.0
libtpu: 0.0.40
codegen_flags: <defaults>
</compile_context>

<pallas_src>
import functools

import jax
import jax.numpy as jnp
from jax.experimental import pallas as pl
from jax.experimental.pallas import tpu as pltpu


def _rnn_decoder_kernel(ids_ref, h0_ref, c0_ref, emb_ih_ref, w_hh_ref, b_ref,
                        w_out_ref, b_out_ref, out_ref, hs_ref, *, T, H, V):
    tb = h0_ref.shape[0]
    n_rows = tb * T
    mm_dtype = w_hh_ref.dtype          # f32, or bf16 when use_bf16_mxu=True

    # ---- Hoisted input projection: all T steps in one MXU call --------------
    # ids are time-major within the tile: local row r = t*tb + j.
    ids = ids_ref[...]                                         # (tb*T, 1) int32
    vocab_iota = jax.lax.broadcasted_iota(jnp.int32, (n_rows, V), 1)
    one_hot = (ids == vocab_iota).astype(mm_dtype)             # (tb*T, V)
    # one_hot @ (emb @ W_ih^T) == emb[ids] @ W_ih^T for in-vocab ids; bias is
    # added once here instead of per step.
    xg_all = jnp.dot(one_hot, emb_ih_ref[...],
                     preferred_element_type=jnp.float32) + b_ref[...]  # (tb*T, 4H)

    # ---- Sequential LSTM recurrence ------------------------------------------
    h = h0_ref[...]                                            # (tb, H) f32
    c = c0_ref[...]                                            # (tb, H) f32
    # T is small and static here; the unrolled body is one small matmul plus
    # gate math, so the static loop keeps all indices static (safest lowering).
    # TODO(synk): for large T (or very large T*V) move T onto an "arbitrary"
    # grid axis with h/c in scratch, or carry (h, c) through a lax.fori_loop.
    for t in range(T):
        xg_t = xg_all[t * tb:(t + 1) * tb, :]                  # (tb, 4H) contiguous
        gates = xg_t + jnp.dot(h.astype(mm_dtype), w_hh_ref[...],
                               preferred_element_type=jnp.float32)
        # Two full-width EUP passes, then lane-slice the results.
        # PyTorch LSTMCell gate order: i, f, g, o.
        sig = jax.nn.sigmoid(gates)
        tah = jnp.tanh(gates)
        i_g = sig[:, 0 * H:1 * H]
        f_g = sig[:, 1 * H:2 * H]
        g_g = tah[:, 2 * H:3 * H]
        o_g = sig[:, 3 * H:4 * H]
        c = f_g * c + i_g * g_g
        h = o_g * jnp.tanh(c)
        hs_ref[:, t, :] = h            # batch-major scratch: (j, t, :) = h_t

    # ---- Deferred output projection: one big matmul + one dense store --------
    cat_hs = hs_ref[...].reshape(n_rows, H)                    # row = j*T + t
    logits = jnp.dot(cat_hs.astype(mm_dtype), w_out_ref[...],
                     preferred_element_type=jnp.float32) + b_out_ref[...]
    out_ref[...] = logits.astype(out_ref.dtype)


def _vmem_limit_bytes():
    """Generation-aware VMEM budget: ~80% of physical VMEM, capped at 100 MiB."""
    phys = 64 * 1024 * 1024            # conservative default (v7x per-core VMEM)
    try:
        info = pltpu.get_tpu_info()
        phys = int(getattr(info, "vmem_capacity_bytes", phys) or phys)
    except Exception:
        pass
    return int(min(phys * 0.8, 100 * 1024 * 1024))


def _pick_batch_tile(B, T, H, V, vmem_limit_bytes):
    """Largest multiple-of-8 batch tile that divides B, fits the VMEM budget,
    and (when possible) keeps the parallel batch grid length >= 2 (megacore)."""
    lane = 128
    f32 = 4

    def tile_bytes(rows, cols):
        # VMEM pads the minor (lane) dim to 128.
        return rows * max(cols, lane) * f32

    # Weights resident across grid steps (conservatively count two buffers).
    weight_bytes = 2 * (tile_bytes(V, 4 * H) + tile_bytes(H, 4 * H)
                        + tile_bytes(1, 4 * H) + tile_bytes(H, V)
                        + tile_bytes(1, V))

    def per_tile_bytes(tb):
        streamed = 2 * (tile_bytes(tb * T, 1)            # ids
                        + 2 * tile_bytes(tb, H)          # h0, c0
                        + tile_bytes(tb * T, V))         # logits out block
        scratch = tile_bytes(tb * T, H)                  # hs scratch
        working = (tile_bytes(tb * T, V)                 # one-hot
                   + 2 * tile_bytes(tb * T, 4 * H)       # x_gates (+ headroom)
                   + 6 * tile_bytes(tb, 4 * H))          # per-step temporaries
        return streamed + scratch + working

    budget = int(vmem_limit_bytes * 0.9) - weight_bytes
    cap = B if B < 16 else B // 2                        # grid >= 2 when B >= 16
    cands = [tb for tb in range(8, cap + 1, 8) if B % tb == 0]
    if not cands:
        return B                                         # tiny/odd batch: one full tile
    best = cands[0]
    for tb in cands:
        if per_tile_bytes(tb) <= budget:
            best = tb
    return best


def rnn_decoder_forward(xs, xs_len, h0, c0, emb, w_ih, w_hh, b, w_out, b_out,
                        *, use_bf16_mxu=False):
    """xs: (B, T) int32; h0/c0: (B, H); emb: (V, E); w_ih: (E, 4H); w_hh: (H, 4H);
    b: (1, 4H) == b_ih + b_hh; w_out: (H, V); b_out: (1, V).
    Returns logits of shape (B*T, V), row = b*T + t (PyTorch ordering)."""
    del xs_len  # pack_padded_sequence is imported but never applied in the reference
    B, T = xs.shape
    V, E = emb.shape
    H = h0.shape[1]
    assert w_ih.shape == (E, 4 * H) and w_hh.shape == (H, 4 * H)
    assert w_out.shape == (H, V) and b.shape == (1, 4 * H) and b_out.shape == (1, V)

    vmem_limit = _vmem_limit_bytes()
    tb = _pick_batch_tile(B, T, H, V, vmem_limit)
    assert B % tb == 0
    grid = (B // tb,)

    # Review #1: fuse embedding with the input projection in the wrapper.
    mm_dtype = jnp.bfloat16 if use_bf16_mxu else jnp.float32
    emb_ih = jnp.dot(emb, w_ih, preferred_element_type=jnp.float32).astype(mm_dtype)
    w_hh_mm = w_hh.astype(mm_dtype)
    w_out_mm = w_out.astype(mm_dtype)

    # Layout plumbing only: flatten ids time-major within each batch tile so
    # tile i, local row r = t*tb + j  <->  token (batch i*tb + j, time t).
    ids_tm = xs.astype(jnp.int32).reshape(B // tb, tb, T)
    ids_tm = jnp.transpose(ids_tm, (0, 2, 1)).reshape(B * T, 1)

    kernel = functools.partial(_rnn_decoder_kernel, T=T, H=H, V=V)

    flops = 2 * B * T * (V * 4 * H + H * 4 * H + H * V)
    transcendentals = B * T * 9 * H
    bytes_accessed = 4 * (B * T + 2 * B * H + B * T * V
                          + V * 4 * H + H * 4 * H + 4 * H + H * V + V)

    out = pl.pallas_call(
        kernel,
        out_shape=jax.ShapeDtypeStruct((B * T, V), jnp.float32),
        grid=grid,
        in_specs=[
            pl.BlockSpec((tb * T, 1), lambda i: (i, 0)),    # ids          (streamed)
            pl.BlockSpec((tb, H), lambda i: (i, 0)),        # h0           (streamed)
            pl.BlockSpec((tb, H), lambda i: (i, 0)),        # c0           (streamed)
            pl.BlockSpec((V, 4 * H), lambda i: (0, 0)),     # emb @ W_ih^T (resident)
            pl.BlockSpec((H, 4 * H), lambda i: (0, 0)),     # W_hh^T       (resident)
            pl.BlockSpec((1, 4 * H), lambda i: (0, 0)),     # b_ih + b_hh  (resident)
            pl.BlockSpec((H, V), lambda i: (0, 0)),         # W_out^T      (resident)
            pl.BlockSpec((1, V), lambda i: (0, 0)),         # b_out        (resident)
        ],
        out_specs=pl.BlockSpec((tb * T, V), lambda i: (i, 0)),
        scratch_shapes=[pltpu.VMEM((tb, T, H), jnp.float32)],
        compiler_params=pltpu.CompilerParams(
            dimension_semantics=("parallel",),
            vmem_limit_bytes=vmem_limit,
        ),
        cost_estimate=pl.CostEstimate(
            flops=flops,
            transcendentals=transcendentals,
            bytes_accessed=bytes_accessed,
        ),
    )(ids_tm, h0, c0, emb_ih, w_hh_mm, b, w_out_mm, b_out)

    # Rows already ordered b*T + t, matching stack(hs, 1).view(-1, H) @ W_out.
    return out


def _reference_forward(xs, h0, c0, emb, w_ih, w_hh, b, w_out, b_out):
    B, T = xs.shape
    H = h0.shape[1]
    ex_all = emb[xs]                                    # (B, T, E)
    h, c = h0, c0
    hs = []
    for t in range(T):
        gates = ex_all[:, t] @ w_ih + h @ w_hh + b
        i_g = jax.nn.sigmoid(gates[:, :H])
        f_g = jax.nn.sigmoid(gates[:, H:2 * H])
        g_g = jnp.tanh(gates[:, 2 * H:3 * H])
        o_g = jax.nn.sigmoid(gates[:, 3 * H:])
        c = f_g * c + i_g * g_g
        h = o_g * jnp.tanh(c)
        hs.append(h)
    cat_hs = jnp.stack(hs, axis=1).reshape(B * T, H)
    return cat_hs @ w_out + b_out


if __name__ == "__main__":
    n_vocab = 128
    embed_size = 32
    hidden_size = 32
    B = 16          # gives a parallel grid of length 2 (tb = 8)
    T = 8

    key = jax.random.PRNGKey(0)
    (k_ids, k_emb, k_ih, k_hh, k_bih, k_bhh,
     k_w, k_b, k_h, k_c) = jax.random.split(key, 10)

    xs = jax.random.randint(k_ids, (B, T), 0, n_vocab, dtype=jnp.int32)
    xs = xs.at[:, -2:].set(0)                       # trailing padding tokens
    xs_len = jnp.full((B,), T - 2, dtype=jnp.int32)

    # nn.Embedding(padding_idx=0): row 0 is zero.
    emb = jax.random.normal(k_emb, (n_vocab, embed_size), dtype=jnp.float32)
    emb = emb.at[0].set(0.0)

    # nn.LSTMCell init: uniform(-1/sqrt(H), 1/sqrt(H)); weights stored pre-transposed.
    bound = 1.0 / jnp.sqrt(jnp.float32(hidden_size))
    w_ih = jax.random.uniform(k_ih, (embed_size, 4 * hidden_size),
                              minval=-bound, maxval=bound, dtype=jnp.float32)
    w_hh = jax.random.uniform(k_hh, (hidden_size, 4 * hidden_size),
                              minval=-bound, maxval=bound, dtype=jnp.float32)
    b_ih = jax.random.uniform(k_bih, (1, 4 * hidden_size),
                              minval=-bound, maxval=bound, dtype=jnp.float32)
    b_hh = jax.random.uniform(k_bhh, (1, 4 * hidden_size),
                              minval=-bound, maxval=bound, dtype=jnp.float32)
    b = b_ih + b_hh

    w_out = jax.random.uniform(k_w, (hidden_size, n_vocab),
                               minval=-bound, maxval=bound, dtype=jnp.float32)
    b_out = jax.random.uniform(k_b, (1, n_vocab),
                               minval=-bound, maxval=bound, dtype=jnp.float32)

    # enc_states[0][0] / enc_states[1][0] from the encoder.
    h0 = jax.random.normal(k_h, (B, hidden_size), dtype=jnp.float32)
    c0 = jax.random.normal(k_c, (B, hidden_size), dtype=jnp.float32)

    logits = rnn_decoder_forward(xs, xs_len, h0, c0, emb, w_ih, w_hh, b,
                                 w_out, b_out)
    logits = jax.block_until_ready(logits)

    ref = _reference_forward(xs, h0, c0, emb, w_ih, w_hh, b, w_out, b_out)
    assert logits.shape == (B * T, n_vocab)
    assert jnp.max(jnp.abs(logits - ref)) < 2e-4, "mismatch vs JAX reference"

    print("KERNEL_OK")
</pallas_src>

<mosaic_0001>
module attributes {stable_mosaic.version = 11 : i64} {
  func.func @_rnn_decoder_kernel(%arg0: i32, %arg1: memref<64x1xi32, #tpu.memory_space<vmem>>, %arg2: memref<8x32xf32, #tpu.memory_space<vmem>>, %arg3: memref<8x32xf32, #tpu.memory_space<vmem>>, %arg4: memref<128x128xf32, #tpu.memory_space<vmem>>, %arg5: memref<32x128xf32, #tpu.memory_space<vmem>>, %arg6: memref<1x128xf32, #tpu.memory_space<vmem>>, %arg7: memref<32x128xf32, #tpu.memory_space<vmem>>, %arg8: memref<1x128xf32, #tpu.memory_space<vmem>>, %arg9: memref<64x128xf32, #tpu.memory_space<vmem>>, %arg10: memref<8x8x32xf32, #tpu.memory_space<vmem>>) attributes {dimension_semantics = [#tpu.dimension_semantics<parallel>], iteration_bounds = array<i64: 2>, scalar_prefetch = 0 : i64, scratch_operands = 1 : i64, tpu.core_type = #tpu.core_type<tc>, window_params = [{transform_indices = @transform_0, window_bounds = array<i64: 64, 1>}, {transform_indices = @transform_1, window_bounds = array<i64: 8, 32>}, {transform_indices = @transform_2, window_bounds = array<i64: 8, 32>}, {pipeline_mode = #tpu.pipeline_mode<synchronous>, transform_indices = @transform_3, window_bounds = array<i64: 128, 128>}, {pipeline_mode = #tpu.pipeline_mode<synchronous>, transform_indices = @transform_4, window_bounds = array<i64: 32, 128>}, {pipeline_mode = #tpu.pipeline_mode<synchronous>, transform_indices = @transform_5, window_bounds = array<i64: 1, 128>}, {pipeline_mode = #tpu.pipeline_mode<synchronous>, transform_indices = @transform_6, window_bounds = array<i64: 32, 128>}, {pipeline_mode = #tpu.pipeline_mode<synchronous>, transform_indices = @transform_7, window_bounds = array<i64: 1, 128>}, {transform_indices = @transform_8, window_bounds = array<i64: 64, 128>}]} {
    %c0 = arith.constant 0 : index
    %c0_0 = arith.constant 0 : index
    %0 = vector.load %arg1[%c0, %c0_0] : memref<64x1xi32, #tpu.memory_space<vmem>>, vector<64x1xi32>
    %1 = tpu.iota {dimensions = array<i32: 1>} : vector<64x128xi32>
    %2 = vector.broadcast %0 : vector<64x1xi32> to vector<64x128xi32>
    %3 = arith.cmpi eq, %2, %1 : vector<64x128xi32>
    %4 = arith.extui %3 : vector<64x128xi1> to vector<64x128xi32>
    %5 = arith.sitofp %4 : vector<64x128xi32> to vector<64x128xf32>
    %c0_1 = arith.constant 0 : index
    %c0_2 = arith.constant 0 : index
    %6 = vector.load %arg4[%c0_1, %c0_2] : memref<128x128xf32, #tpu.memory_space<vmem>>, vector<128x128xf32>
    %cst = arith.constant dense<0.000000e+00> : vector<64x128xf32>
    %7 = tpu.matmul %5, %6, %cst {dimension_numbers = #tpu.dot_dimension_numbers<[1], [0], [0], [1], [0, 0, 1, 1], [], []>} : vector<64x128xf32>, vector<128x128xf32>, vector<64x128xf32> -> vector<64x128xf32>
    %c0_3 = arith.constant 0 : index
    %c0_4 = arith.constant 0 : index
    %8 = vector.load %arg6[%c0_3, %c0_4] : memref<1x128xf32, #tpu.memory_space<vmem>>, vector<1x128xf32>
    %9 = vector.broadcast %8 : vector<1x128xf32> to vector<64x128xf32>
    %10 = arith.addf %7, %9 : vector<64x128xf32>
    %c0_5 = arith.constant 0 : index
    %c0_6 = arith.constant 0 : index
    %11 = vector.load %arg2[%c0_5, %c0_6] : memref<8x32xf32, #tpu.memory_space<vmem>>, vector<8x32xf32>
    %c0_7 = arith.constant 0 : index
    %c0_8 = arith.constant 0 : index
    %12 = vector.load %arg3[%c0_7, %c0_8] : memref<8x32xf32, #tpu.memory_space<vmem>>, vector<8x32xf32>
    %13 = vector.extract_strided_slice %10 {offsets = [0, 0], sizes = [8, 128], strides = [1, 1]} : vector<64x128xf32> to vector<8x128xf32>
    %c0_9 = arith.constant 0 : index
    %c0_10 = arith.constant 0 : index
    %14 = vector.load %arg5[%c0_9, %c0_10] : memref<32x128xf32, #tpu.memory_space<vmem>>, vector<32x128xf32>
    %cst_11 = arith.constant dense<0.000000e+00> : vector<8x128xf32>
    %15 = tpu.matmul %11, %14, %cst_11 {dimension_numbers = #tpu.dot_dimension_numbers<[1], [0], [0], [1], [0, 0, 1, 1], [], []>} : vector<8x32xf32>, vector<32x128xf32>, vector<8x128xf32> -> vector<8x128xf32>
    %16 = arith.addf %13, %15 : vector<8x128xf32>
    %17 = arith.negf %16 : vector<8x128xf32>
    %18 = math.exp %17 : vector<8x128xf32>
    %cst_12 = arith.constant 1.000000e+00 : f32
    %19 = vector.broadcast %cst_12 : f32 to vector<8x128xf32>
    %20 = arith.addf %19, %18 : vector<8x128xf32>
    %21 = arith.divf %19, %20 : vector<8x128xf32>
    %22 = math.tanh %16 : vector<8x128xf32>
    %23 = vector.extract_strided_slice %21 {offsets = [0, 0], sizes = [8, 32], strides = [1, 1]} : vector<8x128xf32> to vector<8x32xf32>
    %24 = vector.extract_strided_slice %21 {offsets = [0, 32], sizes = [8, 32], strides = [1, 1]} : vector<8x128xf32> to vector<8x32xf32>
    %25 = vector.extract_strided_slice %22 {offsets = [0, 64], sizes = [8, 32], strides = [1, 1]} : vector<8x128xf32> to vector<8x32xf32>
    %26 = vector.extract_strided_slice %21 {offsets = [0, 96], sizes = [8, 32], strides = [1, 1]} : vector<8x128xf32> to vector<8x32xf32>
    %27 = arith.mulf %24, %12 : vector<8x32xf32>
    %28 = arith.mulf %23, %25 : vector<8x32xf32>
    %29 = arith.addf %27, %28 : vector<8x32xf32>
    %30 = math.tanh %29 : vector<8x32xf32>
    %31 = arith.mulf %26, %30 : vector<8x32xf32>
    %c0_13 = arith.constant 0 : index
    %c0_14 = arith.constant 0 : index
    %c0_15 = arith.constant 0 : index
    %32 = vector.load %arg10[%c0_13, %c0_14, %c0_15] : memref<8x8x32xf32, #tpu.memory_space<vmem>>, vector<8x1x32xf32>
    %33 = vector.shape_cast %32 : vector<8x1x32xf32> to vector<8x32xf32>
    %34 = vector.shape_cast %31 : vector<8x32xf32> to vector<8x1x32xf32>
    tpu.vector_store %arg10[%c0_13, %c0_14, %c0_15], %34 {strides = array<i32>} : memref<8x8x32xf32, #tpu.memory_space<vmem>>, vector<8x1x32xf32>,
    %35 = vector.extract_strided_slice %10 {offsets = [8, 0], sizes = [8, 128], strides = [1, 1]} : vector<64x128xf32> to vector<8x128xf32>
    %c0_16 = arith.constant 0 : index
    %c0_17 = arith.constant 0 : index
    %36 = vector.load %arg5[%c0_16, %c0_17] : memref<32x128xf32, #tpu.memory_space<vmem>>, vector<32x128xf32>
    %cst_18 = arith.constant dense<0.000000e+00> : vector<8x128xf32>
    %37 = tpu.matmul %31, %36, %cst_18 {dimension_numbers = #tpu.dot_dimension_numbers<[1], [0], [0], [1], [0, 0, 1, 1], [], []>} : vector<8x32xf32>, vector<32x128xf32>, vector<8x128xf32> -> vector<8x128xf32>
    %38 = arith.addf %35, %37 : vector<8x128xf32>
    %39 = arith.negf %38 : vector<8x128xf32>
    %40 = math.exp %39 : vector<8x128xf32>
    %cst_19 = arith.constant 1.000000e+00 : f32
    %41 = vector.broadcast %cst_19 : f32 to vector<8x128xf32>
    %42 = arith.addf %41, %40 : vector<8x128xf32>
    %43 = arith.divf %41, %42 : vector<8x128xf32>
    %44 = math.tanh %38 : vector<8x128xf32>
    %45 = vector.extract_strided_slice %43 {offsets = [0, 0], sizes = [8, 32], strides = [1, 1]} : vector<8x128xf32> to vector<8x32xf32>
    %46 = vector.extract_strided_slice %43 {offsets = [0, 32], sizes = [8, 32], strides = [1, 1]} : vector<8x128xf32> to vector<8x32xf32>
    %47 = vector.extract_strided_slice %44 {offsets = [0, 64], sizes = [8, 32], strides = [1, 1]} : vector<8x128xf32> to vector<8x32xf32>
    %48 = vector.extract_strided_slice %43 {offsets = [0, 96], sizes = [8, 32], strides = [1, 1]} : vector<8x128xf32> to vector<8x32xf32>
    %49 = arith.mulf %46, %29 : vector<8x32xf32>
    %50 = arith.mulf %45, %47 : vector<8x32xf32>
    %51 = arith.addf %49, %50 : vector<8x32xf32>
    %52 = math.tanh %51 : vector<8x32xf32>
    %53 = arith.mulf %48, %52 : vector<8x32xf32>
    %c0_20 = arith.constant 0 : index
    %c1 = arith.constant 1 : index
    %c0_21 = arith.constant 0 : index
    %54 = vector.load %arg10[%c0_20, %c1, %c0_21] : memref<8x8x32xf32, #tpu.memory_space<vmem>>, vector<8x1x32xf32>
    %55 = vector.shape_cast %54 : vector<8x1x32xf32> to vector<8x32xf32>
    %56 = vector.shape_cast %53 : vector<8x32xf32> to vector<8x1x32xf32>
    tpu.vector_store %arg10[%c0_20, %c1, %c0_21], %56 {strides = array<i32>} : memref<8x8x32xf32, #tpu.memory_space<vmem>>, vector<8x1x32xf32>,
    %57 = vector.extract_strided_slice %10 {offsets = [16, 0], sizes = [8, 128], strides = [1, 1]} : vector<64x128xf32> to vector<8x128xf32>
    %c0_22 = arith.constant 0 : index
    %c0_23 = arith.constant 0 : index
    %58 = vector.load %arg5[%c0_22, %c0_23] : memref<32x128xf32, #tpu.memory_space<vmem>>, vector<32x128xf32>
    %cst_24 = arith.constant dense<0.000000e+00> : vector<8x128xf32>
    %59 = tpu.matmul %53, %58, %cst_24 {dimension_numbers = #tpu.dot_dimension_numbers<[1], [0], [0], [1], [0, 0, 1, 1], [], []>} : vector<8x32xf32>, vector<32x128xf32>, vector<8x128xf32> -> vector<8x128xf32>
    %60 = arith.addf %57, %59 : vector<8x128xf32>
    %61 = arith.negf %60 : vector<8x128xf32>
    %62 = math.exp %61 : vector<8x128xf32>
    %cst_25 = arith.constant 1.000000e+00 : f32
    %63 = vector.broadcast %cst_25 : f32 to vector<8x128xf32>
    %64 = arith.addf %63, %62 : vector<8x128xf32>
    %65 = arith.divf %63, %64 : vector<8x128xf32>
    %66 = math.tanh %60 : vector<8x128xf32>
    %67 = vector.extract_strided_slice %65 {offsets = [0, 0], sizes = [8, 32], strides = [1, 1]} : vector<8x128xf32> to vector<8x32xf32>
    %68 = vector.extract_strided_slice %65 {offsets = [0, 32], sizes = [8, 32], strides = [1, 1]} : vector<8x128xf32> to vector<8x32xf32>
    %69 = vector.extract_strided_slice %66 {offsets = [0, 64], sizes = [8, 32], strides = [1, 1]} : vector<8x128xf32> to vector<8x32xf32>
    %70 = vector.extract_strided_slice %65 {offsets = [0, 96], sizes = [8, 32], strides = [1, 1]} : vector<8x128xf32> to vector<8x32xf32>
    %71 = arith.mulf %68, %51 : vector<8x32xf32>
    %72 = arith.mulf %67, %69 : vector<8x32xf32>
    %73 = arith.addf %71, %72 : vector<8x32xf32>
    %74 = math.tanh %73 : vector<8x32xf32>
    %75 = arith.mulf %70, %74 : vector<8x32xf32>
    %c0_26 = arith.constant 0 : index
    %c2 = arith.constant 2 : index
    %c0_27 = arith.constant 0 : index
    %76 = vector.load %arg10[%c0_26, %c2, %c0_27] : memref<8x8x32xf32, #tpu.memory_space<vmem>>, vector<8x1x32xf32>
    %77 = vector.shape_cast %76 : vector<8x1x32xf32> to vector<8x32xf32>
    %78 = vector.shape_cast %75 : vector<8x32xf32> to vector<8x1x32xf32>
    tpu.vector_store %arg10[%c0_26, %c2, %c0_27], %78 {strides = array<i32>} : memref<8x8x32xf32, #tpu.memory_space<vmem>>, vector<8x1x32xf32>,
    %79 = vector.extract_strided_slice %10 {offsets = [24, 0], sizes = [8, 128], strides = [1, 1]} : vector<64x128xf32> to vector<8x128xf32>
    %c0_28 = arith.constant 0 : index
    %c0_29 = arith.constant 0 : index
    %80 = vector.load %arg5[%c0_28, %c0_29] : memref<32x128xf32, #tpu.memory_space<vmem>>, vector<32x128xf32>
    %cst_30 = arith.constant dense<0.000000e+00> : vector<8x128xf32>
    %81 = tpu.matmul %75, %80, %cst_30 {dimension_numbers = #tpu.dot_dimension_numbers<[1], [0], [0], [1], [0, 0, 1, 1], [], []>} : vector<8x32xf32>, vector<32x128xf32>, vector<8x128xf32> -> vector<8x128xf32>
    %82 = arith.addf %79, %81 : vector<8x128xf32>
    %83 = arith.negf %82 : vector<8x128xf32>
    %84 = math.exp %83 : vector<8x128xf32>
    %cst_31 = arith.constant 1.000000e+00 : f32
    %85 = vector.broadcast %cst_31 : f32 to vector<8x128xf32>
    %86 = arith.addf %85, %84 : vector<8x128xf32>
    %87 = arith.divf %85, %86 : vector<8x128xf32>
    %88 = math.tanh %82 : vector<8x128xf32>
    %89 = vector.extract_strided_slice %87 {offsets = [0, 0], sizes = [8, 32], strides = [1, 1]} : vector<8x128xf32> to vector<8x32xf32>
    %90 = vector.extract_strided_slice %87 {offsets = [0, 32], sizes = [8, 32], strides = [1, 1]} : vector<8x128xf32> to vector<8x32xf32>
    %91 = vector.extract_strided_slice %88 {offsets = [0, 64], sizes = [8, 32], strides = [1, 1]} : vector<8x128xf32> to vector<8x32xf32>
    %92 = vector.extract_strided_slice %87 {offsets = [0, 96], sizes = [8, 32], strides = [1, 1]} : vector<8x128xf32> to vector<8x32xf32>
    %93 = arith.mulf %90, %73 : vector<8x32xf32>
    %94 = arith.mulf %89, %91 : vector<8x32xf32>
    %95 = arith.addf %93, %94 : vector<8x32xf32>
    %96 = math.tanh %95 : vector<8x32xf32>
    %97 = arith.mulf %92, %96 : vector<8x32xf32>
    %c0_32 = arith.constant 0 : index
    %c3 = arith.constant 3 : index
    %c0_33 = arith.constant 0 : index
    %98 = vector.load %arg10[%c0_32, %c3, %c0_33] : memref<8x8x32xf32, #tpu.memory_space<vmem>>, vector<8x1x32xf32>
    %99 = vector.shape_cast %98 : vector<8x1x32xf32> to vector<8x32xf32>
    %100 = vector.shape_cast %97 : vector<8x32xf32> to vector<8x1x32xf32>
    tpu.vector_store %arg10[%c0_32, %c3, %c0_33], %100 {strides = array<i32>} : memref<8x8x32xf32, #tpu.memory_space<vmem>>, vector<8x1x32xf32>,
    %101 = vector.extract_strided_slice %10 {offsets = [32, 0], sizes = [8, 128], strides = [1, 1]} : vector<64x128xf32> to vector<8x128xf32>
    %c0_34 = arith.constant 0 : index
    %c0_35 = arith.constant 0 : index
    %102 = vector.load %arg5[%c0_34, %c0_35] : memref<32x128xf32, #tpu.memory_space<vmem>>, vector<32x128xf32>
    %cst_36 = arith.constant dense<0.000000e+00> : vector<8x128xf32>
    %103 = tpu.matmul %97, %102, %cst_36 {dimension_numbers = #tpu.dot_dimension_numbers<[1], [0], [0], [1], [0, 0, 1, 1], [], []>} : vector<8x32xf32>, vector<32x128xf32>, vector<8x128xf32> -> vector<8x128xf32>
    %104 = arith.addf %101, %103 : vector<8x128xf32>
    %105 = arith.negf %104 : vector<8x128xf32>
    %106 = math.exp %105 : vector<8x128xf32>
    %cst_37 = arith.constant 1.000000e+00 : f32
    %107 = vector.broadcast %cst_37 : f32 to vector<8x128xf32>
    %108 = arith.addf %107, %106 : vector<8x128xf32>
    %109 = arith.divf %107, %108 : vector<8x128xf32>
    %110 = math.tanh %104 : vector<8x128xf32>
    %111 = vector.extract_strided_slice %109 {offsets = [0, 0], sizes = [8, 32], strides = [1, 1]} : vector<8x128xf32> to vector<8x32xf32>
    %112 = vector.extract_strided_slice %109 {offsets = [0, 32], sizes = [8, 32], strides = [1, 1]} : vector<8x128xf32> to vector<8x32xf32>
    %113 = vector.extract_strided_slice %110 {offsets = [0, 64], sizes = [8, 32], strides = [1, 1]} : vector<8x128xf32> to vector<8x32xf32>
    %114 = vector.extract_strided_slice %109 {offsets = [0, 96], sizes = [8, 32], strides = [1, 1]} : vector<8x128xf32> to vector<8x32xf32>
    %115 = arith.mulf %112, %95 : vector<8x32xf32>
    %116 = arith.mulf %111, %113 : vector<8x32xf32>
    %117 = arith.addf %115, %116 : vector<8x32xf32>
    %118 = math.tanh %117 : vector<8x32xf32>
    %119 = arith.mulf %114, %118 : vector<8x32xf32>
    %c0_38 = arith.constant 0 : index
    %c4 = arith.constant 4 : index
    %c0_39 = arith.constant 0 : index
    %120 = vector.load %arg10[%c0_38, %c4, %c0_39] : memref<8x8x32xf32, #tpu.memory_space<vmem>>, vector<8x1x32xf32>
    %121 = vector.shape_cast %120 : vector<8x1x32xf32> to vector<8x32xf32>
    %122 = vector.shape_cast %119 : vector<8x32xf32> to vector<8x1x32xf32>
    tpu.vector_store %arg10[%c0_38, %c4, %c0_39], %122 {strides = array<i32>} : memref<8x8x32xf32, #tpu.memory_space<vmem>>, vector<8x1x32xf32>,
    %123 = vector.extract_strided_slice %10 {offsets = [40, 0], sizes = [8, 128], strides = [1, 1]} : vector<64x128xf32> to vector<8x128xf32>
    %c0_40 = arith.constant 0 : index
    %c0_41 = arith.constant 0 : index
    %124 = vector.load %arg5[%c0_40, %c0_41] : memref<32x128xf32, #tpu.memory_space<vmem>>, vector<32x128xf32>
    %cst_42 = arith.constant dense<0.000000e+00> : vector<8x128xf32>
    %125 = tpu.matmul %119, %124, %cst_42 {dimension_numbers = #tpu.dot_dimension_numbers<[1], [0], [0], [1], [0, 0, 1, 1], [], []>} : vector<8x32xf32>, vector<32x128xf32>, vector<8x128xf32> -> vector<8x128xf32>
    %126 = arith.addf %123, %125 : vector<8x128xf32>
    %127 = arith.negf %126 : vector<8x128xf32>
    %128 = math.exp %127 : vector<8x128xf32>
    %cst_43 = arith.constant 1.000000e+00 : f32
    %129 = vector.broadcast %cst_43 : f32 to vector<8x128xf32>
    %130 = arith.addf %129, %128 : vector<8x128xf32>
    %131 = arith.divf %129, %130 : vector<8x128xf32>
    %132 = math.tanh %126 : vector<8x128xf32>
    %133 = vector.extract_strided_slice %131 {offsets = [0, 0], sizes = [8, 32], strides = [1, 1]} : vector<8x128xf32> to vector<8x32xf32>
    %134 = vector.extract_strided_slice %131 {offsets = [0, 32], sizes = [8, 32], strides = [1, 1]} : vector<8x128xf32> to vector<8x32xf32>
    %135 = vector.extract_strided_slice %132 {offsets = [0, 64], sizes = [8, 32], strides = [1, 1]} : vector<8x128xf32> to vector<8x32xf32>
    %136 = vector.extract_strided_slice %131 {offsets = [0, 96], sizes = [8, 32], strides = [1, 1]} : vector<8x128xf32> to vector<8x32xf32>
    %137 = arith.mulf %134, %117 : vector<8x32xf32>
    %138 = arith.mulf %133, %135 : vector<8x32xf32>
    %139 = arith.addf %137, %138 : vector<8x32xf32>
    %140 = math.tanh %139 : vector<8x32xf32>
    %141 = arith.mulf %136, %140 : vector<8x32xf32>
    %c0_44 = arith.constant 0 : index
    %c5 = arith.constant 5 : index
    %c0_45 = arith.constant 0 : index
    %142 = vector.load %arg10[%c0_44, %c5, %c0_45] : memref<8x8x32xf32, #tpu.memory_space<vmem>>, vector<8x1x32xf32>
    %143 = vector.shape_cast %142 : vector<8x1x32xf32> to vector<8x32xf32>
    %144 = vector.shape_cast %141 : vector<8x32xf32> to vector<8x1x32xf32>
    tpu.vector_store %arg10[%c0_44, %c5, %c0_45], %144 {strides = array<i32>} : memref<8x8x32xf32, #tpu.memory_space<vmem>>, vector<8x1x32xf32>,
    %145 = vector.extract_strided_slice %10 {offsets = [48, 0], sizes = [8, 128], strides = [1, 1]} : vector<64x128xf32> to vector<8x128xf32>
    %c0_46 = arith.constant 0 : index
    %c0_47 = arith.constant 0 : index
    %146 = vector.load %arg5[%c0_46, %c0_47] : memref<32x128xf32, #tpu.memory_space<vmem>>, vector<32x128xf32>
    %cst_48 = arith.constant dense<0.000000e+00> : vector<8x128xf32>
    %147 = tpu.matmul %141, %146, %cst_48 {dimension_numbers = #tpu.dot_dimension_numbers<[1], [0], [0], [1], [0, 0, 1, 1], [], []>} : vector<8x32xf32>, vector<32x128xf32>, vector<8x128xf32> -> vector<8x128xf32>
    %148 = arith.addf %145, %147 : vector<8x128xf32>
    %149 = arith.negf %148 : vector<8x128xf32>
    %150 = math.exp %149 : vector<8x128xf32>
    %cst_49 = arith.constant 1.000000e+00 : f32
    %151 = vector.broadcast %cst_49 : f32 to vector<8x128xf32>
    %152 = arith.addf %151, %150 : vector<8x128xf32>
    %153 = arith.divf %151, %152 : vector<8x128xf32>
    %154 = math.tanh %148 : vector<8x128xf32>
    %155 = vector.extract_strided_slice %153 {offsets = [0, 0], sizes = [8, 32], strides = [1, 1]} : vector<8x128xf32> to vector<8x32xf32>
    %156 = vector.extract_strided_slice %153 {offsets = [0, 32], sizes = [8, 32], strides = [1, 1]} : vector<8x128xf32> to vector<8x32xf32>
    %157 = vector.extract_strided_slice %154 {offsets = [0, 64], sizes = [8, 32], strides = [1, 1]} : vector<8x128xf32> to vector<8x32xf32>
    %158 = vector.extract_strided_slice %153 {offsets = [0, 96], sizes = [8, 32], strides = [1, 1]} : vector<8x128xf32> to vector<8x32xf32>
    %159 = arith.mulf %156, %139 : vector<8x32xf32>
    %160 = arith.mulf %155, %157 : vector<8x32xf32>
    %161 = arith.addf %159, %160 : vector<8x32xf32>
    %162 = math.tanh %161 : vector<8x32xf32>
    %163 = arith.mulf %158, %162 : vector<8x32xf32>
    %c0_50 = arith.constant 0 : index
    %c6 = arith.constant 6 : index
    %c0_51 = arith.constant 0 : index
    %164 = vector.load %arg10[%c0_50, %c6, %c0_51] : memref<8x8x32xf32, #tpu.memory_space<vmem>>, vector<8x1x32xf32>
    %165 = vector.shape_cast %164 : vector<8x1x32xf32> to vector<8x32xf32>
    %166 = vector.shape_cast %163 : vector<8x32xf32> to vector<8x1x32xf32>
    tpu.vector_store %arg10[%c0_50, %c6, %c0_51], %166 {strides = array<i32>} : memref<8x8x32xf32, #tpu.memory_space<vmem>>, vector<8x1x32xf32>,
    %167 = vector.extract_strided_slice %10 {offsets = [56, 0], sizes = [8, 128], strides = [1, 1]} : vector<64x128xf32> to vector<8x128xf32>
    %c0_52 = arith.constant 0 : index
    %c0_53 = arith.constant 0 : index
    %168 = vector.load %arg5[%c0_52, %c0_53] : memref<32x128xf32, #tpu.memory_space<vmem>>, vector<32x128xf32>
    %cst_54 = arith.constant dense<0.000000e+00> : vector<8x128xf32>
    %169 = tpu.matmul %163, %168, %cst_54 {dimension_numbers = #tpu.dot_dimension_numbers<[1], [0], [0], [1], [0, 0, 1, 1], [], []>} : vector<8x32xf32>, vector<32x128xf32>, vector<8x128xf32> -> vector<8x128xf32>
    %170 = arith.addf %167, %169 : vector<8x128xf32>
    %171 = arith.negf %170 : vector<8x128xf32>
    %172 = math.exp %171 : vector<8x128xf32>
    %cst_55 = arith.constant 1.000000e+00 : f32
    %173 = vector.broadcast %cst_55 : f32 to vector<8x128xf32>
    %174 = arith.addf %173, %172 : vector<8x128xf32>
    %175 = arith.divf %173, %174 : vector<8x128xf32>
    %176 = math.tanh %170 : vector<8x128xf32>
    %177 = vector.extract_strided_slice %175 {offsets = [0, 0], sizes = [8, 32], strides = [1, 1]} : vector<8x128xf32> to vector<8x32xf32>
    %178 = vector.extract_strided_slice %175 {offsets = [0, 32], sizes = [8, 32], strides = [1, 1]} : vector<8x128xf32> to vector<8x32xf32>
    %179 = vector.extract_strided_slice %176 {offsets = [0, 64], sizes = [8, 32], strides = [1, 1]} : vector<8x128xf32> to vector<8x32xf32>
    %180 = vector.extract_strided_slice %175 {offsets = [0, 96], sizes = [8, 32], strides = [1, 1]} : vector<8x128xf32> to vector<8x32xf32>
    %181 = arith.mulf %178, %161 : vector<8x32xf32>
    %182 = arith.mulf %177, %179 : vector<8x32xf32>
    %183 = arith.addf %181, %182 : vector<8x32xf32>
    %184 = math.tanh %183 : vector<8x32xf32>
    %185 = arith.mulf %180, %184 : vector<8x32xf32>
    %c0_56 = arith.constant 0 : index
    %c7 = arith.constant 7 : index
    %c0_57 = arith.constant 0 : index
    %186 = vector.load %arg10[%c0_56, %c7, %c0_57] : memref<8x8x32xf32, #tpu.memory_space<vmem>>, vector<8x1x32xf32>
    %187 = vector.shape_cast %186 : vector<8x1x32xf32> to vector<8x32xf32>
    %188 = vector.shape_cast %185 : vector<8x32xf32> to vector<8x1x32xf32>
    tpu.vector_store %arg10[%c0_56, %c7, %c0_57], %188 {strides = array<i32>} : memref<8x8x32xf32, #tpu.memory_space<vmem>>, vector<8x1x32xf32>,
    %c0_58 = arith.constant 0 : index
    %c0_59 = arith.constant 0 : index
    %c0_60 = arith.constant 0 : index
    %189 = vector.load %arg10[%c0_58, %c0_59, %c0_60] : memref<8x8x32xf32, #tpu.memory_space<vmem>>, vector<8x8x32xf32>
    %190 = vector.shape_cast %189 : vector<8x8x32xf32> to vector<64x32xf32>
    %c0_61 = arith.constant 0 : index
    %c0_62 = arith.constant 0 : index
    %191 = vector.load %arg7[%c0_61, %c0_62] : memref<32x128xf32, #tpu.memory_space<vmem>>, vector<32x128xf32>
    %cst_63 = arith.constant dense<0.000000e+00> : vector<64x128xf32>
    %192 = tpu.matmul %190, %191, %cst_63 {dimension_numbers = #tpu.dot_dimension_numbers<[1], [0], [0], [1], [0, 0, 1, 1], [], []>} : vector<64x32xf32>, vector<32x128xf32>, vector<64x128xf32> -> vector<64x128xf32>
    %c0_64 = arith.constant 0 : index
    %c0_65 = arith.constant 0 : index
    %193 = vector.load %arg8[%c0_64, %c0_65] : memref<1x128xf32, #tpu.memory_space<vmem>>, vector<1x128xf32>
    %194 = vector.broadcast %193 : vector<1x128xf32> to vector<64x128xf32>
    %195 = arith.addf %192, %194 : vector<64x128xf32>
    %c0_66 = arith.constant 0 : index
    %c0_67 = arith.constant 0 : index
    %196 = vector.load %arg9[%c0_66, %c0_67] : memref<64x128xf32, #tpu.memory_space<vmem>>, vector<64x128xf32>
    tpu.vector_store %arg9[%c0_66, %c0_67], %195 {strides = array<i32>} : memref<64x128xf32, #tpu.memory_space<vmem>>, vector<64x128xf32>,
    return
  }
  func.func @transform_0(%arg0: i32) -> (i32, i32) {
    %c0_i32 = arith.constant 0 : i32
    %c0_i32_0 = arith.constant 0 : i32
    return %arg0, %c0_i32 : i32, i32
  }
  func.func @transform_1(%arg0: i32) -> (i32, i32) {
    %c0_i32 = arith.constant 0 : i32
    %c0_i32_0 = arith.constant 0 : i32
    return %arg0, %c0_i32 : i32, i32
  }
  func.func @transform_2(%arg0: i32) -> (i32, i32) {
    %c0_i32 = arith.constant 0 : i32
    %c0_i32_0 = arith.constant 0 : i32
    return %arg0, %c0_i32 : i32, i32
  }
  func.func @transform_3(%arg0: i32) -> (i32, i32) {
    %c0_i32 = arith.constant 0 : i32
    %c0_i32_0 = arith.constant 0 : i32
    %c0_i32_1 = arith.constant 0 : i32
    return %c0_i32, %c0_i32_0 : i32, i32
  }
  func.func @transform_4(%arg0: i32) -> (i32, i32) {
    %c0_i32 = arith.constant 0 : i32
    %c0_i32_0 = arith.constant 0 : i32
    %c0_i32_1 = arith.constant 0 : i32
    return %c0_i32, %c0_i32_0 : i32, i32
  }
  func.func @transform_5(%arg0: i32) -> (i32, i32) {
    %c0_i32 = arith.constant 0 : i32
    %c0_i32_0 = arith.constant 0 : i32
    %c0_i32_1 = arith.constant 0 : i32
    return %c0_i32, %c0_i32_0 : i32, i32
  }
  func.func @transform_6(%arg0: i32) -> (i32, i32) {
    %c0_i32 = arith.constant 0 : i32
    %c0_i32_0 = arith.constant 0 : i32
    %c0_i32_1 = arith.constant 0 : i32
    return %c0_i32, %c0_i32_0 : i32, i32
  }
  func.func @transform_7(%arg0: i32) -> (i32, i32) {
    %c0_i32 = arith.constant 0 : i32
    %c0_i32_0 = arith.constant 0 : i32
    %c0_i32_1 = arith.constant 0 : i32
    return %c0_i32, %c0_i32_0 : i32, i32
  }
  func.func @transform_8(%arg0: i32) -> (i32, i32) {
    %c0_i32 = arith.constant 0 : i32
    %c0_i32_0 = arith.constant 0 : i32
    return %arg0, %c0_i32 : i32, i32
  }
}

</mosaic_0001>

<bundles_post_ra>
// kernel: tpu_custom_call.1
= control target key start
LH: loop header
LB: loop body
LE: loop exit
PB: predicated region body
PF: predicated region fallthrough
CT: control target
= control target key end

     0   :  { %s2765_s0 = inlined_call_operand.vmem [shape: s32[128,1], index: 0, kind: input, shape index: {}]   ;;  %s2766_s1 = inlined_call_operand.hbm [shape: f32[16,32], index: 1, kind: input, shape index: {}]   ;;  %s2767_s2 = inlined_call_operand.hbm [shape: f32[16,32], index: 2, kind: input, shape index: {}]   ;;  %s2768_s3 = inlined_call_operand.vmem [shape: f32[128,128], index: 3, kind: input, shape index: {}]   ;;  %s2769_s4 = inlined_call_operand.hbm [shape: f32[32,128], index: 4, kind: input, shape index: {}]   ;;  %s2770_s5 = inlined_call_operand.vmem [shape: f32[1,128], index: 5, kind: input, shape index: {}]   ;;  %s2771_s6 = inlined_call_operand.hbm [shape: f32[32,128], index: 6, kind: input, shape index: {}]   ;;  %s2772_s7 = inlined_call_operand.vmem [shape: f32[1,128], index: 7, kind: input, shape index: {}]   ;;  %s2773_s8 = inlined_call_operand.hbm [shape: f32[128,128], index: 8, kind: output, shape index: {}]  }
   0x1   :  { %2779 = sst [smem:[#allocation22_spill]] %s2769_s4 }
   0x2   :  { %2780 = sst [smem:[#allocation23_spill]] %s2771_s6 }
   0x3   :  { %13 = vsyncpa [#allocation4], 0 }
   0x4   :  { %15 = vsyncpa [#allocation4 + $0x1], 0 }
   0x5   :  { %16 = vsyncpa [#allocation7], 0 }
   0x6   :  { %18 = vsyncpa [#allocation7 + $0x1], 0 }
   0x7   :  { %19 = vsyncpa [#allocation10], 0 }
   0x8   :  { %20 = vsyncpa [#allocation5], 0 }
   0x9   :  { %22 = vsyncpa [#allocation5 + $0x1], 0  ;;  %s2175_s27 = smov 0   ;;  %s2177_s28 = smov 0  }
   0xa   :  { %s2179_s29 = smov 0   ;;  %s2181_s30 = smov 0  }
   0xb LB: > { %2781 = sst [smem:[#allocation17_spill]] %s2114_s29  ;;  %s2199_s12 = sadd.s32 4294967295, %s2118_s30   ;;  %s2118_s30 = sphi %s2181_s30, %s2797_s30   ;;  %s2114_s29 = sphi %s2179_s29, %s2799_s29   ;;  %s2110_s28 = sphi %s2177_s28, %s2801_s28   ;;  %s2106_s27 = sphi %s2175_s27, %s2800_s27  }
   0xc   : > { %2782 = sst [smem:[#allocation18_spill]] %s2118_s30  ;;  %p1689_p0 = scmp.ge.s32.totalorder %s2118_s30, 1 }
   0xd   : > { %s2783_s4 = sld [smem:[#allocation22_spill]]  ;;  %p75_p1 = scmp.eq.s32.totalorder %s2199_s12, 0 }
   0xe   : > { %p242_p2 = scmp.lt.s32.totalorder %s2118_s30, 3  ;;  %s2120_s14 = smov [#allocation8]  }
   0xf   : > { %s258_s15 = sshll.u32 %s2120_s14, 4  ;;  %s2785_s6 = sld [smem:[#allocation23_spill]]  ;;  %s259_s15 = int_to_ptr.vmem [resolvable:$true] %s258_s15 }
  0x10   : > { %p2204_p3 = pnand %p1689_p0, %p242_p2  ;;  %s2121_s19 = smov [#allocation9]  }
  0x11   : > { %s275_s20 = sshll.u32 %s2121_s19, 4  ;;  %s2122_s21 = smov 128   ;;  %s276_s20 = int_to_ptr.vmem [resolvable:$true] %s275_s20 }
  0x12   : > { %p1785_p4 = pneg %p2204_p3  ;;  %s2123_s22 = smov 8  }
  0x13   : > { %s256_s11 = sshll.u32 %s2783_s4, 4  ;;  %s1688_s23 = sadd.s32 4294967294, %s2118_s30   ;;  %s257_s11 = int_to_ptr.hbm [resolvable:$true] %s256_s11 }
  0x14   : > { %p1786_p6 = pnand %p1785_p4, %p75_p1  ;;  %s2218_s24 = sadd.s32 1, %s2118_s30  }
  0x15   : > { %s273_s18 = sshll.u32 %s2785_s6, 4  ;;  %2786 = sst [smem:[#allocation19_spill]] %s2218_s24  ;;  %s274_s18 = int_to_ptr.hbm [resolvable:$true] %s273_s18 }
  0x16   : > { %1788 = dma.hbm_to_vmem [thread:$0]  (!%p1786_p6), %s257_s11, 512, %s259_s15, [#allocation7], %s2122_s21, %s2122_s21, %s2123_s22  }
  0x17   : > { %1791 = dma.hbm_to_vmem [thread:$0]  (!%p1786_p6), %s274_s18, 512, %s276_s20, [#allocation10], %s2122_s21, %s2122_s21, %s2123_s22  }
  0x18   : > { %s58_s25 = ssub.s32 %s2118_s30, %s2218_s24  ;;  %s61_s26 = sadd.s32 1, %s2114_s29 }
  0x19   : > { %p59_p7 = scmp.eq.s32.totalorder %s58_s25, 0  ;;  %p68_p8 = scmp.ne.s32.totalorder %s2114_s29, %s2110_s28 }
  0x1a   : > { %p69_p9 = scmp.eq.s32.totalorder %s2118_s30, 0  ;;  %p74_p10 = scmp.ne.s32.totalorder %s2110_s28, %s2106_s27 }
  0x1b   : > { %s2229_s9 = scalar_select %p59_p7, %s2114_s29, %s61_s26  }
  0x1c   : > { %p2231_p11 = por %p69_p9, %p68_p8  ;;  %p2237_p12 = por %p75_p1, %p74_p10 }
  0x1d   : > { %2787 = sst [smem:[#allocation20_spill]] %s2229_s9  ;;  %p229_p13 = scmp.eq.s32.totalorder %s2199_s12, 1 }
  0x1e   : > { %p235_p0 = scmp.eq.s32.totalorder %s1688_s23, 1  ;;  %p1805_p2 = scmp.lt.s32.totalorder %s2118_s30, 2 }
  0x1f   : > { %s301_s14 = sand.u32 1, %s2114_s29   ;;  %p2244_p4 = por %p229_p13, %p68_p8 }
  0x20   : > { %p2248_p6 = por %p235_p0, %p74_p10  ;;  %s2252_s17 = sshll.u32 %s301_s14, 3 }
  0x21   : > { %s1694_s18 = sshll.u32 %s2118_s30, 3  ;;  %s305_s22 = scalar_lea.vmem [#allocation3], %s2252_s17 }
  0x22   : > { %s2791_s16 = scalar_select %p2248_p6, 1, 0 }
  0x23   : > { %s309_s21 = scalar_lea.hbm %s2766_s1, %s1694_s18  ;;  %s313_s23 = sshll.u32 %s305_s22, 4  ;;  %s314_s23 = int_to_ptr.vmem [resolvable:$true] %s313_s23 }
  0x24   : > { %2792 = sst [smem:[#allocation21_spill]] %s2791_s16  ;;  %s311_s25 = sshll.u32 %s309_s21, 4  ;;  %s312_s25 = int_to_ptr.hbm [resolvable:$true] %s311_s25 }
  0x25   : > { %p2261_p7 = pnand %p1805_p2, %p2231_p11  ;;  %s328_s9 = scalar_lea.hbm %s2767_s2, %s1694_s18 }
  0x26   : > { %s320_s29 = sand.u32 1, %s2118_s30   ;;  %s302_s24 = scalar_lea.sflag [#allocation4], %s301_s14 }
  0x27   : > { %s1980_s19 = sshra.s32 %s312_s25, 4  ;;  %p1984_p9 = pneg %p2261_p7  ;;  %s1981_s19 = int_to_ptr.hbm [resolvable:$true] %s1980_s19 }
  0x28   : > { %s1982_s20 = scalar_lea.hbm %s1981_s19, 8  ;;  %s1987_s22 = scalar_lea.hbm %s2766_s1, 16 }
  0x29   : > { %p1983_p8 = scmp.ne.s32.totalorder %s1981_s19, %s1982_s20  ;;  %p1988_p13 = scmp.lt.s32.totalorder %s1981_s19, %s2766_s1 }
  0x2a   : > { %p1989_p0 = scmp.lt.s32.totalorder %s1987_s22, %s1982_s20 }
  0x2b   : > { %p1985_p10 = pnand %p1984_p9, %p1983_p8 }
  0x2c   : > { %p1990_p2 = por %p1989_p0, %p1988_p13 }
  0x2d   : > { %p1986_p11 = pneg %p1985_p10 }
  0x2f   : > { %p1991_p5 = pnand %p1990_p2, %p1986_p11 }
  0x31   : > { %1994 = shalt.err (!%p1991_p5)
}
  0x32   : > { %1795 = dma.hbm_to_vmem [thread:$0]  (!%p2261_p7), %s312_s25, 128, %s314_s23, %s302_s24  }
  0x33   : > { %s330_s14 = sshll.u32 %s328_s9, 4  ;;  %s324_s18 = scalar_lea.vmem [#allocation6], %s2252_s17  ;;  %s331_s14 = int_to_ptr.hbm [resolvable:$true] %s330_s14 }
  0x34   : > { %s332_s30 = sshll.u32 %s324_s18, 4  ;;  %s321_s10 = scalar_lea.sflag [#allocation7], %s320_s29  ;;  %s333_s30 = int_to_ptr.vmem [resolvable:$true] %s332_s30 }
  0x35   : > { %s2010_s21 = sshra.s32 %s331_s14, 4  ;;  %s2017_s22 = scalar_lea.hbm %s2767_s2, 16  ;;  %s2011_s21 = int_to_ptr.hbm [resolvable:$true] %s2010_s21 }
  0x36   : > { %s2012_s16 = scalar_lea.hbm %s2011_s21, 8  ;;  %p2018_p5 = scmp.lt.s32.totalorder %s2011_s21, %s2767_s2 }
  0x37   : > { %p2013_p8 = scmp.ne.s32.totalorder %s2011_s21, %s2012_s16  ;;  %p2019_p13 = scmp.lt.s32.totalorder %s2017_s22, %s2012_s16 }
  0x39   : > { %p2015_p10 = pnand %p2013_p8, %p1984_p9  ;;  %p2020_p0 = por %p2019_p13, %p2018_p5 }
  0x3b   : > { %p2016_p11 = pneg %p2015_p10 }
  0x3d   : > { %p2021_p2 = pnand %p2020_p0, %p2016_p11 }
  0x3f   : > { %2024 = shalt.err (!%p2021_p2)
}
  0x40   : > { %1798 = dma.hbm_to_vmem [thread:$0]  (!%p2261_p7), %s331_s14, 128, %s333_s30, %s321_s10  }
  0x41   : > { %341 = sbr.rel (%p2204_p3) target bundleno = 5016 (0x1398), region = 52  ;;  %s2297_s29 = sand.u32 (!%p2204_p3), 1, %s2110_s28  }
  0x42   : > { %s1698_s9 = sshll.u32 (!%p2204_p3), %s2297_s29, 3  ;;  %s344_s17 = scalar_lea.sflag (!%p2204_p3), [#allocation4], %s2297_s29 }
  0x43   : > { %s2301_s23 = scalar_lea.vmem (!%p2204_p3), [#allocation3], %s1698_s9 }
  0x46   : > { %2085 = dma.done.wait (%p2237_p12), %s344_s17, 128  }
  0x47   : > { %2087 = vsyncadd (%p2237_p12), %s344_s17, 4294967168  ;;  %s353_s30 = sand.u32 1, %s2199_s12   ;;  %s2308_s16 = scalar_lea.vmem [#allocation6], %s1698_s9 }
  0x48   : > { %s354_s13 = scalar_lea.sflag [#allocation7], %s353_s30 }
  0x49   : > { %2089 = dma.done.wait (%p2237_p12), %s354_s13, 128  }
  0x4a   : > { %2091 = vsyncadd (%p2237_p12), %s354_s13, 4294967168 }
  0x4b   : > { %2093 = dma.done.wait (%p75_p1), [#allocation7], 512  }
  0x4c   : > { %2095 = vsyncadd (%p75_p1), [#allocation7], 4294966784 }
  0x4d   : > { %2097 = dma.done.wait (%p75_p1), [#allocation10], 512  }
  0x4e   : > { %2099 = vsyncadd (%p75_p1), [#allocation10], 4294966784  ;;  %s1703_s25 = sshll.u32 %s2199_s12, 3  ;;  %v2124_v0 = vmov 0   ;;  %v491_v2 = vld [vmem:[%s2768_s3 + $0x78] sm:$0xff]  ;;  %v490_v3 = vld [vmem:[%s2768_s3 + $0x70] sm:$0xff]  ;;  %v426_v24 = vlaneseq }
  0x4f   : > { %1851 = vset.pattern.permute.xlu0 %v2124_v0  ;;  %p412_p3 = scmp.lt.s32.totalorder %s1703_s25, 15  ;;  %1852 = vset.pattern.permute.xlu2 %v2124_v0  ;;  %v489_v4 = vld [vmem:[%s2768_s3 + $0x68] sm:$0xff]  ;;  %v488_v5 = vld [vmem:[%s2768_s3 + $0x60] sm:$0xff]  ;;  %v2341_v6 = vld [vmem:[#allocation8 + $0x18] sm:$0xff]  ;;  %vm543_vm0 = vcmask 261120   ;;  %s2125_s6 = smov 32  }
  0x50   : > { %1853 = vset.pattern.permute.xlu1 %v2124_v0  ;;  %496 = vmatpush.msra.mxu0 %v491_v2  ;;  %v2343_v7 = vld [vmem:[#allocation8 + $0x10] sm:$0xff]  ;;  %v487_v8 = vld [vmem:[%s2768_s3 + $0x58] sm:$0xff]  ;;  %v2349_v9 = vld [vmem:[#allocation8 + $0x8] sm:$0xff]  ;;  %v2413_v25 = vand.u32 127, %v426_v24  ;;  %v2126_v27 = vmov 1.0   ;;  %s2127_s18 = smov 64  }
  0x51   : > { %s2803_s25 = smov (!%p412_p3, %s1703_s25), 15  ;;  %1751 = vmatpush.msra.mxu1 %v491_v2  ;;  %559 = vmatpush.msra.mxu2 %v2341_v6  ;;  %v486_v10 = vld [vmem:[%s2768_s3 + $0x50] sm:$0xff]  ;;  %v2356_v11 = vld [vmem:[#allocation8] sm:$0xff]  ;;  %v485_v13 = vld [vmem:[%s2768_s3 + $0x48] sm:$0xff]  ;;  %s1750_s20 = sshll.u32 %s2199_s12, 6 }
  0x52   : > { %s1704_s11 = sshll.u32 %s2803_s25, 3  ;;  %497 = vmatpush.msra.mxu0 %v490_v3  ;;  %792 = vmatpush.msra.mxu3 %v2341_v6  ;;  %v537_v12 = vld [vmem:[%s2301_s23] sm:$0xff]  ;;  %v483_v15 = vld [vmem:[%s2768_s3 + $0x38] sm:$0xff]  ;;  %v482_v16 = vld [vmem:[%s2768_s3 + $0x30] sm:$0xff]  ;;  %s1557_s24 = scalar_lea.hbm %s2773_s8, %s1750_s20 }
  0x53   : > { %s2326_s14 = scalar_lea.vmem %s2765_s0, %s1704_s11  ;;  %1752 = vmatpush.msra.mxu1 %v490_v3  ;;  %560 = vmatpush.msra.mxu2 %v2343_v7  ;;  %v484_v14 = vld [vmem:[%s2768_s3 + $0x40] sm:$0xff]  ;;  %v481_v17 = vld [vmem:[%s2768_s3 + $0x28] sm:$0xff]  ;;  %v479_v19 = vld [vmem:[%s2768_s3 + $0x18] sm:$0xff]  ;;  %s1560_s17 = sshll.u32 %s1557_s24, 4  ;;  %s1561_s17 = int_to_ptr.hbm [resolvable:$true] %s1560_s17 }
  0x54   : > { %v418_v1 = vld [vmem:[%s2326_s14] sm:$0xff]  ;;  %498 = vmatpush.msra.mxu0 %v489_v4  ;;  %793 = vmatpush.msra.mxu3 %v2343_v7  ;;  %v478_v20 = vld [vmem:[%s2768_s3 + $0x10] sm:$0xff]  ;;  %v477_v21 = vld [vmem:[%s2768_s3 + $0x8] sm:$0xff]  ;;  %s1546_s30 = scalar_lea.sflag [#allocation5], %s2297_s29  ;;  %s2054_s12 = sshra.s32 %s1561_s17, 4  ;;  %s2055_s12 = int_to_ptr.hbm [resolvable:$true] %s2054_s12 }
  0x55   : > { %429 = vperm.xlu0 %1851, %v418_v1   ;;  %1753 = vmatpush.msra.mxu1 %v489_v4  ;;  %v480_v18 = vld [vmem:[%s2768_s3 + $0x20] sm:$0xff]  ;;  %v538_v23 = vld [vmem:[%s2308_s16] sm:$0xff]  ;;  %v419_v34 = vld [vmem:[%s2326_s14 + $0x8] sm:$0xff]  ;;  %s2056_s13 = scalar_lea.hbm %s2055_s12, 64  ;;  %s2060_s26 = scalar_lea.hbm %s2773_s8, 128 }
  0x56   : > { %499 = vmatpush.msra.mxu0 %v488_v5  ;;  %561 = vmatpush.msra.mxu2 %v2349_v9  ;;  %v476_v22 = vld [vmem:[%s2768_s3] sm:$0xff]  ;;  %p2057_p1 = scmp.ne.s32.totalorder %s2055_s12, %s2056_s13  ;;  %p2061_p9 = scmp.lt.s32.totalorder %s2055_s12, %s2773_s8 }
  0x57   : > { %1754 = vmatpush.msra.mxu1 %v488_v5  ;;  %794 = vmatpush.msra.mxu3 %v2349_v9  ;;  %v2420_v28 = vld [vmem:[%s2770_s5] ss:$0 sm:$0xff]  ;;  %p2062_p8 = scmp.lt.s32.totalorder %s2060_s26, %s2056_s13 }
  0x58   : > { %500 = vmatpush.msra.mxu0 %v487_v8  ;;  %562 = vmatpush.msra.mxu2 %v2356_v11  ;;  %p2058_p12 = pnand %p2057_p1, %p2244_p4 }
  0x59   : > { %1755 = vmatpush.msra.mxu1 %v487_v8  ;;  %1721 = vmatmul.msk.f32.vlgmr.msra.gmra.mxu2 %vm543_vm0, %v537_v12  ;;  %p2063_p10 = por %p2062_p8, %p2061_p9 }
  0x5a   : > { %501 = vmatpush.msra.mxu0 %v486_v10  ;;  %795 = vmatpush.msra.mxu3 %v2356_v11  ;;  %p2059_p7 = pneg %p2058_p12 }
  0x5b   : > { %678 = vmatpush.msrb.mxu2 %v2341_v6  ;;  %1756 = vmatpush.msra.mxu1 %v486_v10 }
  0x5c   : > { %502 = vmatpush.msra.mxu0 %v485_v13  ;;  %1134 = vmatpush.msrb.mxu3 %v2341_v6  ;;  %p2064_p11 = pnand %p2063_p10, %p2059_p7 }
  0x5d   : > { %679 = vmatpush.msrb.mxu2 %v2343_v7  ;;  %1757 = vmatpush.msra.mxu1 %v485_v13 }
  0x5e   : > { %503 = vmatpush.msra.mxu0 %v484_v14  ;;  %1135 = vmatpush.msrb.mxu3 %v2343_v7 }
  0x5f   : > { %680 = vmatpush.msrb.mxu2 %v2349_v9  ;;  %1758 = vmatpush.msra.mxu1 %v484_v14 }
  0x60   : > { %504 = vmatpush.msra.mxu0 %v483_v15  ;;  %1136 = vmatpush.msrb.mxu3 %v2349_v9 }
  0x61   : > { %681 = vmatpush.msrb.mxu2 %v2356_v11  ;;  %1759 = vmatpush.msra.mxu1 %v483_v15 }
  0x62   : > { %505 = vmatpush.msra.mxu0 %v482_v16  ;;  %1137 = vmatpush.msrb.mxu3 %v2356_v11 }
  0x63   : > { %1020 = vmatpush.msra.mxu2 %v2341_v6  ;;  %1760 = vmatpush.msra.mxu1 %v482_v16 }
  0x64   : > { %506 = vmatpush.msra.mxu0 %v481_v17  ;;  %589 = vrot.lane.b32.xlu1 %v538_v23, %s2125_s6  ;;  %v420_v23 = vld [vmem:[%s2326_s14 + $0x10] sm:$0xff] }
  0x65   : > { %1021 = vmatpush.msra.mxu2 %v2343_v7  ;;  %1761 = vmatpush.msra.mxu1 %v481_v17 }
  0x66   : > { %507 = vmatpush.msra.mxu0 %v480_v18 }
  0x67   : > { %1022 = vmatpush.msra.mxu2 %v2349_v9  ;;  %1762 = vmatpush.msra.mxu1 %v480_v18 }
  0x68   : > { %508 = vmatpush.msra.mxu0 %v479_v19 }
  0x69   : > { %1023 = vmatpush.msra.mxu2 %v2356_v11  ;;  %1763 = vmatpush.msra.mxu1 %v479_v19 }
  0x6a   : > { %509 = vmatpush.msra.mxu0 %v478_v20 }
  0x6b   : > { %1764 = vmatpush.msra.mxu1 %v478_v20 }
  0x6c   : > { %510 = vmatpush.msra.mxu0 %v477_v21 }
  0x6d   : > { %1765 = vmatpush.msra.mxu1 %v477_v21 }
  0x6e   : > { %511 = vmatpush.msra.mxu0 %v476_v22 }
  0x6f   : > { %1766 = vmatpush.msra.mxu1 %v476_v22 }
  0x71   : > { %906 = vmatpush.msrb.mxu1 %v2341_v6 }
  0x73   : > { %907 = vmatpush.msrb.mxu1 %v2343_v7 }
  0x75   : > { %908 = vmatpush.msrb.mxu1 %v2349_v9 }
  0x77   : > { %909 = vmatpush.msrb.mxu1 %v2356_v11 }
  0xc7   : > { %v430_v26 = vpop.permute.xlu0 %429 }
  0xc8   : > { %vm452_vm1 = vcmp.eq.s32.totalorder %v430_v26, %v2413_v25 }
  0xc9   : > { %1713 = vmatmul.msk.f32.vlgmr.msra.gmra.mxu0 %vm452_vm1, %v2126_v27 }
  0xd6   : > { %v590_v51 = vpop.permute.xlu1 %589 }
  0xdc   : > { %v564_v30 = vpop.f32.mrf.mxu2 }
 0x146   : > { %v513_v29 = vpop.f32.mrf.mxu0 }
 0x147   : > { %v514_v31 = vadd.f32 %v2420_v28, %v513_v29 }
 0x149   : > { %v567_v32 = vadd.f32 %v564_v30, %v514_v31 }
 0x14b   : > { %1856 = vtanh.f32 %v567_v32  ;;  %v1722_v35 = vmul.f32 -1.442695, %v567_v32 }
 0x14d   : > { %1858 = vpow2.f32 %v1722_v35 }
 0x151   : > { %v1857_v33 = vpop.eup %1856 }
 0x152   : > { %594 = vrot.lane.b32.xlu0 %v1857_v33, %s2127_s18 }
 0x153   : > { %v1859_v36 = vpop.eup %1858 }
 0x154   : > { %v571_v37 = vadd.f32 1.0, %v1859_v36  ;;  %v423_v36 = vld [vmem:[%s2326_s14 + $0x28] sm:$0xff] }
 0x156   : > { %1860 = vrcp.f32 %v571_v37  ;;  %v583_v43 = vand.u32 2147483648, %v571_v37  ;;  %vm577_vm3 = vweird.f32 %v571_v37  ;;  %v581_v44 = vand.u32 2147483647, %v571_v37 }
 0x158   : > { %v584_v46 = vor.u32 1.1754944e-38, %v583_v43  ;;  %vm582_vm5 = vcmp.eq.f32.partialorder %v581_v44, 8.507059e+37 }
 0x15a   : > { %432 = vperm.xlu0 %1851, %v419_v34  }
 0x15c   : > { %v1861_v38 = vpop.eup %1860 }
 0x15d   : > { %v573_v39 = vmul.f32 %v1861_v38, %v571_v37  ;;  %vm578_vm2 = vweird.f32 %v1861_v38  ;;  %v421_v37 = vld [vmem:[%s2326_s14 + $0x18] sm:$0xff] }
 0x15e   : > { %vm579_vm4 = vmor %vm577_vm3, %vm578_vm2 }
 0x15f   : > { %v574_v40 = vsub.f32 1.0, %v573_v39 }
 0x161   : > { %v575_v41 = vmul.f32 %v1861_v38, %v574_v40 }
 0x163   : > { %v576_v42 = vadd.f32 %v1861_v38, %v575_v41 }
 0x165   : > { %v580_v45 = vsel %vm579_vm4, %v1861_v38, %v576_v42 }
 0x166   : > { %v585_v47 = vsel %vm582_vm5, %v584_v46, %v580_v45 }
 0x167   : > { %v592_v52 = vmul.f32 %v590_v51, %v585_v47 }
 0x1c4   : > { %v595_v48 = vpop.permute.xlu0 %594 }
 0x1c5   : > { %v597_v49 = vmul.f32 %v595_v48, %v585_v47 }
 0x1c7   : > { %599 = vrot.lane.b32.xlu1 %v597_v49, %s2125_s6 }
 0x1cc   : > { %v433_v50 = vpop.permute.xlu0 %432 }
 0x1cd   : > { %vm453_vm6 = vcmp.eq.s32.totalorder %v433_v50, %v2413_v25 }
 0x1ce   : > { %1714 = vmatmul.msk.f32.gmra.mxu0 %vm453_vm6, %v2126_v27 }
 0x239   : > { %v600_v53 = vpop.permute.xlu1 %599 }
 0x23a   : > { %v602_v54 = vadd.f32 %v600_v53, %v592_v52 }
 0x23c   : > { %1862 = vtanh.f32 %v602_v54 }
 0x242   : > { %v1863_v55 = vpop.eup %1862 }
 0x243   : > { %605 = vrot.lane.b32.xlu2 %v1863_v55, %s2127_s18 }
 0x24b   : > { %v516_v59 = vpop.f32.mrf.mxu0 }
 0x24c   : > { %v517_v60 = vadd.f32 %v2420_v28, %v516_v59 }
 0x29d   : > { %v606_v56 = vpop.permute.xlu2 %605 }
 0x29e   : > { %v2429_v57 = vmul.f32 %v606_v56, %v585_v47 }
 0x2a0   : > { %662 = vrot.lane.b32.xlu2 %v2429_v57, %s2125_s6 }
 0x2fa   : > { %v663_v58 = vpop.permute.xlu2 %662 }
 0x2fb   : > { %1723 = vmatmul.msk.f32.vlgmr.msrb.gmra.mxu2 %vm543_vm0, %v663_v58 }
 0x2fc   : > { %1362 = vmatpush.msrb.mxu2 %v2341_v6 }
 0x2fe   : > { %1363 = vmatpush.msrb.mxu2 %v2343_v7 }
 0x300   : > { %1364 = vmatpush.msrb.mxu2 %v2349_v9 }
 0x302   : > { %1365 = vmatpush.msrb.mxu2 %v2356_v11 }
 0x37e   : > { %v683_v61 = vpop.f32.mrf.mxu2 }
 0x37f   : > { %v686_v62 = vadd.f32 %v683_v61, %v517_v60 }
 0x381   : > { %1864 = vtanh.f32 %v686_v62  ;;  %v1724_v0 = vmul.f32 -1.442695, %v686_v62 }
 0x383   : > { %1866 = vpow2.f32 %v1724_v0 }
 0x387   : > { %v1865_v63 = vpop.eup %1864 }
 0x388   : > { %709 = vrot.lane.b32.xlu1 %v1865_v63, %s2127_s18 }
 0x389   : > { %v1867_v1 = vpop.eup %1866 }
 0x38a   : > { %v690_v2 = vadd.f32 1.0, %v1867_v1 }
 0x38c   : > { %1868 = vrcp.f32 %v690_v2  ;;  %v702_v12 = vand.u32 2147483648, %v690_v2  ;;  %vm696_vm8 = vweird.f32 %v690_v2  ;;  %v700_v13 = vand.u32 2147483647, %v690_v2 }
 0x38e   : > { %v703_v15 = vor.u32 1.1754944e-38, %v702_v12  ;;  %vm701_vm10 = vcmp.eq.f32.partialorder %v700_v13, 8.507059e+37 }
 0x392   : > { %v1869_v3 = vpop.eup %1868 }
 0x393   : > { %v692_v4 = vmul.f32 %v1869_v3, %v690_v2  ;;  %vm697_vm7 = vweird.f32 %v1869_v3 }
 0x394   : > { %vm698_vm9 = vmor %vm696_vm8, %vm697_vm7 }
 0x395   : > { %v693_v5 = vsub.f32 1.0, %v692_v4 }
 0x397   : > { %v694_v8 = vmul.f32 %v1869_v3, %v693_v5 }
 0x399   : > { %v695_v10 = vadd.f32 %v1869_v3, %v694_v8 }
 0x39b   : > { %v699_v14 = vsel %vm698_vm9, %v1869_v3, %v695_v10 }
 0x39c   : > { %v704_v17 = vsel %vm701_vm10, %v703_v15, %v699_v14 }
 0x39d   : > { %v707_v19 = vmul.f32 %v704_v17, %v602_v54  ;;  %v424_v54 = vld [vmem:[%s2326_s14 + $0x30] sm:$0xff] }
 0x3fa   : > { %v710_v16 = vpop.permute.xlu1 %709 }
 0x3fb   : > { %v712_v18 = vmul.f32 %v710_v16, %v704_v17 }
 0x3fd   : > { %714 = vrot.lane.b32.xlu2 %v712_v18, %s2125_s6 }
 0x405   : > { %435 = vperm.xlu2 %1852, %v420_v23  }
 0x457   : > { %v715_v20 = vpop.permute.xlu2 %714 }
 0x458   : > { %v717_v21 = vadd.f32 %v715_v20, %v707_v19 }
 0x45a   : > { %1870 = vtanh.f32 %v717_v21 }
 0x45f   : > { %v436_v29 = vpop.permute.xlu2 %435 }
 0x460   : > { %v1871_v22 = vpop.eup %1870  ;;  %vm454_vm11 = vcmp.eq.s32.totalorder %v436_v29, %v2413_v25 }
 0x461   : > { %720 = vrot.lane.b32.xlu0 %v1871_v22, %s2127_s18  ;;  %1715 = vmatmul.msk.f32.gmra.mxu0 %vm454_vm11, %v2126_v27 }
 0x4d3   : > { %v721_v24 = vpop.permute.xlu0 %720 }
 0x4d4   : > { %v2443_v26 = vmul.f32 %v721_v24, %v704_v17 }
 0x4d6   : > { %776 = vrot.lane.b32.xlu1 %v2443_v26, %s2125_s6 }
 0x4de   : > { %v519_v31 = vpop.f32.mrf.mxu0 }
 0x4df   : > { %v520_v32 = vadd.f32 %v2420_v28, %v519_v31 }
 0x548   : > { %v777_v30 = vpop.permute.xlu1 %776 }
 0x549   : > { %1725 = vmatmul.msk.f32.vlgmr.msra.gmra.mxu3 %vm543_vm0, %v777_v30  ;;  %v422_v30 = vld [vmem:[%s2326_s14 + $0x20] sm:$0xff] }
 0x5cc   : > { %v797_v33 = vpop.f32.mrf.mxu3 }
 0x5cd   : > { %v800_v34 = vadd.f32 %v797_v33, %v520_v32 }
 0x5cf   : > { %1872 = vtanh.f32 %v800_v34  ;;  %v1726_v38 = vmul.f32 -1.442695, %v800_v34 }
 0x5d1   : > { %1874 = vpow2.f32 %v1726_v38 }
 0x5d5   : > { %v1873_v35 = vpop.eup %1872 }
 0x5d6   : > { %823 = vrot.lane.b32.xlu0 %v1873_v35, %s2127_s18 }
 0x5d7   : > { %v1875_v39 = vpop.eup %1874 }
 0x5d8   : > { %v804_v40 = vadd.f32 1.0, %v1875_v39 }
 0x5da   : > { %1876 = vrcp.f32 %v804_v40  ;;  %v816_v46 = vand.u32 2147483648, %v804_v40  ;;  %vm810_vm13 = vweird.f32 %v804_v40  ;;  %v814_v47 = vand.u32 2147483647, %v804_v40 }
 0x5dc   : > { %v817_v49 = vor.u32 1.1754944e-38, %v816_v46  ;;  %vm815_vm15 = vcmp.eq.f32.partialorder %v814_v47, 8.507059e+37 }
 0x5de   : > { %444 = vperm.xlu0 %1851, %v423_v36  }
 0x5e0   : > { %v1877_v41 = vpop.eup %1876 }
 0x5e1   : > { %v806_v42 = vmul.f32 %v1877_v41, %v804_v40  ;;  %vm811_vm12 = vweird.f32 %v1877_v41 }
 0x5e2   : > { %vm812_vm14 = vmor %vm810_vm13, %vm811_vm12 }
 0x5e3   : > { %v807_v43 = vsub.f32 1.0, %v806_v42 }
 0x5e5   : > { %v808_v44 = vmul.f32 %v1877_v41, %v807_v43 }
 0x5e6   : > { %438 = vperm.xlu0 %1851, %v421_v37  }
 0x5e7   : > { %v809_v45 = vadd.f32 %v1877_v41, %v808_v44 }
 0x5e9   : > { %v813_v48 = vsel %vm812_vm14, %v1877_v41, %v809_v45 }
 0x5ea   : > { %v818_v51 = vsel %vm815_vm15, %v817_v49, %v813_v48 }
 0x5eb   : > { %v821_v56 = vmul.f32 %v818_v51, %v717_v21 }
 0x648   : > { %v824_v50 = vpop.permute.xlu0 %823 }
 0x649   : > { %v826_v52 = vmul.f32 %v824_v50, %v818_v51 }
 0x64b   : > { %828 = vrot.lane.b32.xlu1 %v826_v52, %s2125_s6 }
 0x650   : > { %v445_v53 = vpop.permute.xlu0 %444 }
 0x651   : > { %vm457_vm1 = vcmp.eq.s32.totalorder %v445_v53, %v2413_v25 }
 0x652   : > { %1718 = vmatmul.msk.f32.vlgmr.msra.gmra.mxu1 %vm457_vm1, %v2126_v27 }
 0x653   : > { %447 = vperm.xlu1 %1853, %v424_v54   ;;  %1248 = vmatpush.msra.mxu1 %v2341_v6  ;;  %v425_v6 = vld [vmem:[%s2326_s14 + $0x38] sm:$0xff]  ;;  %s1702_s14 = sshll.u32 %s2297_s29, 6 }
 0x654   : > { %s410_s19 = scalar_lea.vmem [#allocation11], %s1702_s14 }
 0x655   : > { %1249 = vmatpush.msra.mxu1 %v2343_v7  ;;  %s1558_s9 = sshll.u32 %s410_s19, 4  ;;  %s1559_s9 = int_to_ptr.vmem [resolvable:$true] %s1558_s9 }
 0x657   : > { %1250 = vmatpush.msra.mxu1 %v2349_v9 }
 0x658   : > { %v439_v55 = vpop.permute.xlu0 %438 }
 0x659   : > { %vm455_vm2 = vcmp.eq.s32.totalorder %v439_v55, %v2413_v25  ;;  %1251 = vmatpush.msra.mxu1 %v2356_v11 }
 0x65a   : > { %1716 = vmatmul.msk.f32.gmra.mxu0 %vm455_vm2, %v2126_v27 }
 0x6bd   : > { %v829_v58 = vpop.permute.xlu1 %828 }
 0x6be   : > { %v831_v59 = vadd.f32 %v829_v58, %v821_v56 }
 0x6c0   : > { %1878 = vtanh.f32 %v831_v59 }
 0x6c5   : > { %v448_v60 = vpop.permute.xlu1 %447 }
 0x6c6   : > { %v1879_v61 = vpop.eup %1878  ;;  %vm458_vm3 = vcmp.eq.s32.totalorder %v448_v60, %v2413_v25 }
 0x6c7   : > { %834 = vrot.lane.b32.xlu2 %v1879_v61, %s2127_s18  ;;  %1719 = vmatmul.msk.f32.gmra.mxu1 %vm458_vm3, %v2126_v27 }
 0x6cf   : > { %450 = vperm.xlu2 %1852, %v425_v6   ;;  %v2475_v63 = vpop.f32.mrf.mxu1 }
 0x6d7   : > { %v522_v2 = vpop.f32.mrf.mxu0 }
 0x6d8   : > { %v523_v3 = vadd.f32 %v2420_v28, %v522_v2 }
 0x721   : > { %v835_v7 = vpop.permute.xlu2 %834 }
 0x722   : > { %v2468_v9 = vmul.f32 %v835_v7, %v818_v51 }
 0x724   : > { %890 = vrot.lane.b32.xlu1 %v2468_v9, %s2125_s6 }
 0x729   : > { %v451_v11 = vpop.permute.xlu2 %450 }
 0x72a   : > { %vm459_vm4 = vcmp.eq.s32.totalorder %v451_v11, %v2413_v25 }
 0x72b   : > { %1720 = vmatmul.msk.f32.gmra.mxu1 %vm459_vm4, %v2126_v27 }
 0x744   : > { %v2477_v0 = vpop.f32.mrf.mxu1 }
 0x796   : > { %v891_v62 = vpop.permute.xlu1 %890 }
 0x797   : > { %1727 = vmatmul.msk.f32.vlgmr.msrb.gmra.mxu1 %vm543_vm0, %v891_v62  ;;  %v529_v62 = vadd.f32 %v2420_v28, %v2475_v63 }
 0x7a8   : > { %v2479_v1 = vpop.f32.mrf.mxu1 }
 0x814   : > { %v911_v4 = vpop.f32.mrf.mxu1 }
 0x815   : > { %v914_v5 = vadd.f32 %v911_v4, %v523_v3 }
 0x817   : > { %1880 = vtanh.f32 %v914_v5  ;;  %v1728_v10 = vmul.f32 -1.442695, %v914_v5 }
 0x819   : > { %1882 = vpow2.f32 %v1728_v10 }
 0x81d   : > { %v1881_v8 = vpop.eup %1880 }
 0x81e   : > { %937 = vrot.lane.b32.xlu2 %v1881_v8, %s2127_s18 }
 0x81f   : > { %v1883_v12 = vpop.eup %1882 }
 0x820   : > { %v918_v13 = vadd.f32 1.0, %v1883_v12 }
 0x822   : > { %1884 = vrcp.f32 %v918_v13  ;;  %v930_v19 = vand.u32 2147483648, %v918_v13  ;;  %vm924_vm6 = vweird.f32 %v918_v13  ;;  %v928_v20 = vand.u32 2147483647, %v918_v13 }
 0x824   : > { %v931_v22 = vor.u32 1.1754944e-38, %v930_v19  ;;  %vm929_vm8 = vcmp.eq.f32.partialorder %v928_v20, 8.507059e+37 }
 0x828   : > { %v1885_v14 = vpop.eup %1884 }
 0x829   : > { %v920_v15 = vmul.f32 %v1885_v14, %v918_v13  ;;  %vm925_vm5 = vweird.f32 %v1885_v14 }
 0x82a   : > { %vm926_vm7 = vmor %vm924_vm6, %vm925_vm5 }
 0x82b   : > { %v921_v16 = vsub.f32 1.0, %v920_v15 }
 0x82d   : > { %v922_v17 = vmul.f32 %v1885_v14, %v921_v16 }
 0x82f   : > { %v923_v18 = vadd.f32 %v1885_v14, %v922_v17 }
 0x831   : > { %v927_v21 = vsel %vm926_vm7, %v1885_v14, %v923_v18  ;;  %vm649_vm7 = vcmask 253952  }
 0x832   : > { %v932_v24 = vsel %vm929_vm8, %v931_v22, %v927_v21 }
 0x833   : > { %v935_v31 = vmul.f32 %v932_v24, %v831_v59 }
 0x878   : > { %v938_v23 = vpop.permute.xlu2 %937 }
 0x879   : > { %v940_v29 = vmul.f32 %v938_v23, %v932_v24 }
 0x87b   : > { %942 = vrot.lane.b32.xlu0 %v940_v29, %s2125_s6 }
 0x883   : > { %441 = vperm.xlu0 %1851, %v422_v30  }
 0x8ed   : > { %v943_v32 = vpop.permute.xlu0 %942 }
 0x8ee   : > { %v945_v33 = vadd.f32 %v943_v32, %v935_v31 }
 0x8f0   : > { %1886 = vtanh.f32 %v945_v33 }
 0x8f5   : > { %v442_v34 = vpop.permute.xlu0 %441 }
 0x8f6   : > { %v1887_v35 = vpop.eup %1886  ;;  %vm456_vm9 = vcmp.eq.s32.totalorder %v442_v34, %v2413_v25  ;;  %v532_v34 = vadd.f32 %v2420_v28, %v2477_v0 }
 0x8f7   : > { %1717 = vmatmul.msk.f32.gmra.mxu0 %vm456_vm9, %v2126_v27  ;;  %948 = vrot.lane.b32.xlu1 %v1887_v35, %s2127_s18 }
 0x969   : > { %v949_v36 = vpop.permute.xlu1 %948 }
 0x96a   : > { %v2488_v37 = vmul.f32 %v949_v36, %v932_v24 }
 0x96c   : > { %1004 = vrot.lane.b32.xlu2 %v2488_v37, %s2125_s6 }
 0x974   : > { %v525_v39 = vpop.f32.mrf.mxu0 }
 0x975   : > { %v526_v40 = vadd.f32 %v2420_v28, %v525_v39 }
 0x9c6   : > { %v1005_v38 = vpop.permute.xlu2 %1004 }
 0x9c7   : > { %1729 = vmatmul.msk.f32.vlgmr.msra.gmra.mxu2 %vm543_vm0, %v1005_v38 }
 0xa4a   : > { %v1025_v41 = vpop.f32.mrf.mxu2 }
 0xa4b   : > { %v1028_v42 = vadd.f32 %v1025_v41, %v526_v40 }
 0xa4d   : > { %1888 = vtanh.f32 %v1028_v42  ;;  %v1730_v27 = vmul.f32 -1.442695, %v1028_v42 }
 0xa4f   : > { %1890 = vpow2.f32 %v1730_v27 }
 0xa53   : > { %v1889_v25 = vpop.eup %1888 }
 0xa54   : > { %1051 = vrot.lane.b32.xlu1 %v1889_v25, %s2127_s18 }
 0xa55   : > { %v1891_v43 = vpop.eup %1890 }
 0xa56   : > { %v1032_v44 = vadd.f32 1.0, %v1891_v43 }
 0xa58   : > { %1892 = vrcp.f32 %v1032_v44  ;;  %v1044_v50 = vand.u32 2147483648, %v1032_v44  ;;  %vm1038_vm11 = vweird.f32 %v1032_v44  ;;  %v1042_v51 = vand.u32 2147483647, %v1032_v44 }
 0xa5a   : > { %v1045_v53 = vor.u32 1.1754944e-38, %v1044_v50  ;;  %vm1043_vm13 = vcmp.eq.f32.partialorder %v1042_v51, 8.507059e+37 }
 0xa5e   : > { %v1893_v45 = vpop.eup %1892 }
 0xa5f   : > { %v1034_v46 = vmul.f32 %v1893_v45, %v1032_v44  ;;  %vm1039_vm10 = vweird.f32 %v1893_v45 }
 0xa60   : > { %vm1040_vm12 = vmor %vm1038_vm11, %vm1039_vm10 }
 0xa61   : > { %v1035_v47 = vsub.f32 1.0, %v1034_v46 }
 0xa63   : > { %v1036_v48 = vmul.f32 %v1893_v45, %v1035_v47 }
 0xa65   : > { %v1037_v49 = vadd.f32 %v1893_v45, %v1036_v48 }
 0xa67   : > { %v1041_v52 = vsel %vm1040_vm12, %v1893_v45, %v1037_v49 }
 0xa68   : > { %v1046_v55 = vsel %vm1043_vm13, %v1045_v53, %v1041_v52 }
 0xa69   : > { %v1049_v58 = vmul.f32 %v1046_v55, %v945_v33 }
 0xac6   : > { %v1052_v54 = vpop.permute.xlu1 %1051 }
 0xac7   : > { %v1054_v56 = vmul.f32 %v1052_v54, %v1046_v55 }
 0xac9   : > { %1056 = vrot.lane.b32.xlu2 %v1054_v56, %s2125_s6 }
 0xb23   : > { %v1057_v59 = vpop.permute.xlu2 %1056 }
 0xb24   : > { %v1059_v60 = vadd.f32 %v1057_v59, %v1049_v58 }
 0xb26   : > { %1894 = vtanh.f32 %v1059_v60 }
 0xb2c   : > { %v1895_v61 = vpop.eup %1894 }
 0xb2d   : > { %1062 = vrot.lane.b32.xlu0 %v1895_v61, %s2127_s18 }
 0xb9f   : > { %v1063_v6 = vpop.permute.xlu0 %1062 }
 0xba0   : > { %v2497_v7 = vmul.f32 %v1063_v6, %v1046_v55  ;;  %v726_v55 = vrot.slane %v2443_v26, 2 }
 0xba2   : > { %1118 = vrot.lane.b32.xlu1 %v2497_v7, %s2125_s6  ;;  %v734_v56 = vperm.slane %v726_v55, 0  ;;  %v1068_v58 = vrot.slane %v2497_v7, 2 }
 0xba4   : > { %v1076_v59 = vperm.slane %v1068_v58, 0 }
 0xc14   : > { %v1119_v11 = vpop.permute.xlu1 %1118 }
 0xc15   : > { %1731 = vmatmul.msk.f32.vlgmr.msrb.gmra.mxu3 %vm543_vm0, %v1119_v11 }
 0xc98   : > { %v1139_v2 = vpop.f32.mrf.mxu3 }
 0xc99   : > { %v1142_v3 = vadd.f32 %v1139_v2, %v529_v62 }
 0xc9b   : > { %1896 = vtanh.f32 %v1142_v3  ;;  %v1732_v5 = vmul.f32 -1.442695, %v1142_v3  ;;  %v840_v3 = vrot.slane %v2468_v9, 2 }
 0xc9d   : > { %1898 = vpow2.f32 %v1732_v5  ;;  %v848_v5 = vperm.slane %v840_v3, 0 }
 0xca1   : > { %v1897_v4 = vpop.eup %1896 }
 0xca2   : > { %1165 = vrot.lane.b32.xlu2 %v1897_v4, %s2127_s18 }
 0xca3   : > { %v1899_v8 = vpop.eup %1898 }
 0xca4   : > { %v1146_v10 = vadd.f32 1.0, %v1899_v8 }
 0xca6   : > { %1900 = vrcp.f32 %v1146_v10  ;;  %v1158_v17 = vand.u32 2147483648, %v1146_v10  ;;  %vm1152_vm15 = vweird.f32 %v1146_v10  ;;  %v1156_v63 = vand.u32 2147483647, %v1146_v10 }
 0xca8   : > { %v1159_v19 = vor.u32 1.1754944e-38, %v1158_v17  ;;  %vm1157_vm2 = vcmp.eq.f32.partialorder %v1156_v63, 8.507059e+37 }
 0xcac   : > { %v1901_v12 = vpop.eup %1900 }
 0xcad   : > { %v1148_v13 = vmul.f32 %v1901_v12, %v1146_v10  ;;  %vm1153_vm14 = vweird.f32 %v1901_v12 }
 0xcae   : > { %vm1154_vm1 = vmor %vm1152_vm15, %vm1153_vm14 }
 0xcaf   : > { %v1149_v14 = vsub.f32 1.0, %v1148_v13  ;;  %v612_v13 = vrot.slane %v2429_v57, 3 }
 0xcb1   : > { %v1150_v15 = vmul.f32 %v1901_v12, %v1149_v14 }
 0xcb3   : > { %v1151_v16 = vadd.f32 %v1901_v12, %v1150_v15  ;;  %v620_v15 = vperm.slane %v612_v13, 0 }
 0xcb5   : > { %v1155_v18 = vsel %vm1154_vm1, %v1901_v12, %v1151_v16  ;;  %v955_v16 = vrot.slane %v2488_v37, 3 }
 0xcb6   : > { %v1160_v21 = vsel %vm1157_vm2, %v1159_v19, %v1155_v18 }
 0xcb7   : > { %v1163_v23 = vmul.f32 %v1160_v21, %v1059_v60  ;;  %v841_v60 = vrot.slane %v2468_v9, 3  ;;  %v963_v63 = vperm.slane %v955_v16, 0 }
 0xcb9   : > { %v849_v61 = vperm.slane %v841_v60, 0 }
 0xcfc   : > { %v1166_v20 = vpop.permute.xlu2 %1165 }
 0xcfd   : > { %v1168_v22 = vmul.f32 %v1166_v20, %v1160_v21  ;;  %v728_v20 = vrot.slane %v2443_v26, 4 }
 0xcff   : > { %1170 = vrot.lane.b32.xlu0 %v1168_v22, %s2125_s6  ;;  %v1070_v22 = vrot.slane %v2497_v7, 4 }
 0xd71   : > { %v1171_v24 = vpop.permute.xlu0 %1170 }
 0xd72   : > { %v1173_v29 = vadd.f32 %v1171_v24, %v1163_v23  ;;  %v1078_v23 = vperm.slane %v1070_v22, 0  ;;  %v843_v24 = vrot.slane %v2468_v9, 5 }
 0xd74   : > { %1902 = vtanh.f32 %v1173_v29 }
 0xd7a   : > { %v1903_v30 = vpop.eup %1902 }
 0xd7b   : > { %1176 = vrot.lane.b32.xlu1 %v1903_v30, %s2127_s18 }
 0xded   : > { %v1177_v31 = vpop.permute.xlu1 %1176 }
 0xdee   : > { %v2507_v32 = vmul.f32 %v1177_v31, %v1160_v21  ;;  %v736_v21 = vperm.slane %v728_v20, 0 }
 0xdf0   : > { %1232 = vrot.lane.b32.xlu2 %v2507_v32, %s2125_s6  ;;  %v1183_v6 = vrot.slane %v2507_v32, 3  ;;  %v1182_v8 = vrot.slane %v2507_v32, 2  ;;  %v1185_v30 = vrot.slane %v2507_v32, 5 }
 0xdf2   : > { %v1191_v11 = vperm.slane %v1183_v6, 0  ;;  %v1190_v12 = vperm.slane %v1182_v8, 0  ;;  %v1193_v31 = vperm.slane %v1185_v30, 0 }
 0xe4a   : > { %v1233_v33 = vpop.permute.xlu2 %1232 }
 0xe4b   : > { %1733 = vmatmul.msk.f32.vlgmr.msra.gmra.mxu1 %vm543_vm0, %v1233_v33  ;;  %v617_v33 = vperm.slane %v2429_v57, 0 }
 0xec8   : > { %v1253_v35 = vpop.f32.mrf.mxu1 }
 0xec9   : > { %v1256_v36 = vadd.f32 %v1253_v35, %v532_v34 }
 0xecb   : > { %1904 = vtanh.f32 %v1256_v36  ;;  %v1734_v39 = vmul.f32 -1.442695, %v1256_v36 }
 0xecd   : > { %1906 = vpow2.f32 %v1734_v39 }
 0xed1   : > { %v1905_v38 = vpop.eup %1904 }
 0xed2   : > { %1279 = vrot.lane.b32.xlu0 %v1905_v38, %s2127_s18 }
 0xed3   : > { %v1907_v40 = vpop.eup %1906 }
 0xed4   : > { %v1260_v41 = vadd.f32 1.0, %v1907_v40 }
 0xed6   : > { %1908 = vrcp.f32 %v1260_v41  ;;  %v1272_v45 = vand.u32 2147483648, %v1260_v41  ;;  %vm1266_vm4 = vweird.f32 %v1260_v41  ;;  %v1270_v0 = vand.u32 2147483647, %v1260_v41 }
 0xed8   : > { %v1273_v47 = vor.u32 1.1754944e-38, %v1272_v45  ;;  %vm1271_vm6 = vcmp.eq.f32.partialorder %v1270_v0, 8.507059e+37 }
 0xedc   : > { %v1909_v42 = vpop.eup %1908 }
 0xedd   : > { %v1262_v25 = vmul.f32 %v1909_v42, %v1260_v41  ;;  %vm1267_vm3 = vweird.f32 %v1909_v42 }
 0xede   : > { %vm1268_vm5 = vmor %vm1266_vm4, %vm1267_vm3 }
 0xedf   : > { %v1263_v27 = vsub.f32 1.0, %v1262_v25 }
 0xee1   : > { %v1264_v43 = vmul.f32 %v1909_v42, %v1263_v27 }
 0xee3   : > { %v1265_v44 = vadd.f32 %v1909_v42, %v1264_v43 }
 0xee5   : > { %v1269_v46 = vsel %vm1268_vm5, %v1909_v42, %v1265_v44  ;;  %v535_v44 = vadd.f32 %v2420_v28, %v2479_v1  ;;  %v727_v28 = vrot.slane %v2443_v26, 3 }
 0xee6   : > { %v1274_v49 = vsel %vm1271_vm6, %v1273_v47, %v1269_v46  ;;  %v611_v47 = vrot.slane %v2429_v57, 2 }
 0xee7   : > { %v1277_v51 = vmul.f32 %v1274_v49, %v1173_v29  ;;  %v851_v29 = vperm.slane %v843_v24, 0  ;;  %v735_v1 = vperm.slane %v727_v28, 0 }
 0xf44   : > { %v1280_v48 = vpop.permute.xlu0 %1279 }
 0xf45   : > { %v1282_v50 = vmul.f32 %v1280_v48, %v1274_v49  ;;  %v619_v48 = vperm.slane %v611_v47, 0  ;;  %v729_v47 = vrot.slane %v2443_v26, 5 }
 0xf47   : > { %1284 = vrot.lane.b32.xlu1 %v1282_v50, %s2125_s6 }
 0xfb9   : > { %v1285_v52 = vpop.permute.xlu1 %1284 }
 0xfba   : > { %v2516_v53 = vadd.f32 %v1285_v52, %v1277_v51 }
 0xfbc   : > { %1910 = vtanh.f32 %v2516_v53 }
 0xfc2   : > { %v1911_v54 = vpop.eup %1910 }
 0xfc3   : > { %1290 = vrot.lane.b32.xlu2 %v1911_v54, %s2127_s18  ;;  %v1069_v54 = vrot.slane %v2497_v7, 3 }
 0xfc5   : > { %v1077_v55 = vperm.slane %v1069_v54, 0  ;;  %v844_v54 = vrot.slane %v2468_v9, 6 }
 0xfcb   : > { %744 = vrot.lane.b32.xlu2 %v734_v56, %s2125_s6  ;;  %v842_v56 = vrot.slane %v2468_v9, 4 }
 0xfcd   : > { %v850_v58 = vperm.slane %v842_v56, 0  ;;  %v852_v56 = vperm.slane %v844_v54, 0 }
 0xfd3   : > { %1086 = vrot.lane.b32.xlu2 %v1076_v59, %s2125_s6  ;;  %v1184_v59 = vrot.slane %v2507_v32, 4 }
 0xfd5   : > { %v1192_v60 = vperm.slane %v1184_v59, 0  ;;  %v1074_v59 = vperm.slane %v2497_v7, 0 }
 0xfdb   : > { %860 = vrot.lane.b32.xlu2 %v849_v61, %s2125_s6  ;;  %v614_v61 = vrot.slane %v2429_v57, 5 }
 0xfdd   : > { %v622_v6 = vperm.slane %v614_v61, 0 }
 0xfe3   : > { %1202 = vrot.lane.b32.xlu2 %v1191_v11, %s2125_s6  ;;  %v957_v11 = vrot.slane %v2488_v37, 5 }
 0xfe5   : > { %v965_v3 = vperm.slane %v957_v11, 0  ;;  %v616_v11 = vrot.slane %v2429_v57, 7 }
0x101d   : > { %v1291_v62 = vpop.permute.xlu2 %1290 }
0x101e   : > { %v2528_v2 = vmul.f32 %v1291_v62, %v1274_v49  ;;  %v954_v49 = vrot.slane %v2488_v37, 2 }
0x1020   : > { %1346 = vrot.lane.b32.xlu0 %v2528_v2, %s2125_s6  ;;  %v1297_v18 = vrot.slane %v2528_v2, 3  ;;  %v962_v50 = vperm.slane %v954_v49, 0  ;;  %v1296_v51 = vrot.slane %v2528_v2, 2  ;;  %v737_v49 = vperm.slane %v729_v47, 0 }
0x1022   : > { %v1305_v19 = vperm.slane %v1297_v18, 0  ;;  %v1304_v52 = vperm.slane %v1296_v51, 0 }
0x1025   : > { %v745_v4 = vpop.permute.xlu2 %744 }
0x1026   : > { %766 = vst.msk [vmem:[#allocation2 + $0x11] sm:$0x1] %vm649_vm7, %v745_v4  ;;  %v1299_v4 = vrot.slane %v2528_v2, 5 }
0x1028   : > { %858 = vrot.lane.b32.xlu0 %v848_v5, %s2125_s6  ;;  %v1307_v5 = vperm.slane %v1299_v4, 0 }
0x102d   : > { %v1087_v10 = vpop.permute.xlu2 %1086 }
0x102e   : > { %1108 = vst.msk [vmem:[#allocation2 + $0x14] sm:$0x1] %vm649_vm7, %v1087_v10 }
0x1030   : > { %1200 = vrot.lane.b32.xlu0 %v1190_v12, %s2125_s6  ;;  %v615_v12 = vrot.slane %v2429_v57, 6 }
0x1032   : > { %v623_v13 = vperm.slane %v615_v12, 0 }
0x1035   : > { %v861_v14 = vpop.permute.xlu2 %860 }
0x1036   : > { %881 = vst.msk [vmem:[#allocation2 + $0x1a] sm:$0x1] %vm649_vm7, %v861_v14 }
0x1038   : > { %631 = vrot.lane.b32.xlu0 %v620_v15, %s2125_s6  ;;  %v846_v15 = vperm.slane %v2468_v9, 0 }
0x103d   : > { %v1203_v17 = vpop.permute.xlu2 %1202 }
0x103e   : > { %1223 = vst.msk [vmem:[#allocation2 + $0x1d] sm:$0x1] %vm649_vm7, %v1203_v17  ;;  %v958_v17 = vrot.slane %v2488_v37, 6 }
0x1040   : > { %974 = vrot.lane.b32.xlu0 %v963_v63, %s2125_s6  ;;  %v966_v18 = vperm.slane %v958_v17, 0 }
0x1048   : > { %1316 = vrot.lane.b32.xlu0 %v1305_v19, %s2125_s6 }
0x1050   : > { %748 = vrot.lane.b32.xlu0 %v736_v21, %s2125_s6 }
0x1058   : > { %1090 = vrot.lane.b32.xlu0 %v1078_v23, %s2125_s6  ;;  %v1188_v23 = vperm.slane %v2507_v32, 0 }
0x1060   : > { %864 = vrot.lane.b32.xlu0 %v851_v29, %s2125_s6 }
0x1068   : > { %1206 = vrot.lane.b32.xlu0 %v1193_v31, %s2125_s6 }
0x1070   : > { %625 = vrot.lane.b32.xlu0 %v617_v33, %s2125_s6  ;;  %v1300_v33 = vrot.slane %v2528_v2, 6 }
0x1092   : > { %v1347_v34 = vpop.permute.xlu0 %1346 }
0x1093   : > { %1735 = vmatmul.msk.f32.vlgmr.msrb.gmra.mxu2 %vm543_vm0, %v1347_v34 }
0x109a   : > { %v859_v35 = vpop.permute.xlu0 %858 }
0x109b   : > { %880 = vst.msk [vmem:[#allocation2 + $0x12] sm:$0x1] %vm649_vm7, %v859_v35  ;;  %v1308_v35 = vperm.slane %v1300_v33, 0  ;;  %v725_v33 = vrot.slane %v2443_v26, 1 }
0x10a2   : > { %v1201_v36 = vpop.permute.xlu0 %1200 }
0x10a3   : > { %1222 = vst.msk [vmem:[#allocation2 + $0x15] sm:$0x1] %vm649_vm7, %v1201_v36  ;;  %v613_v36 = vrot.slane %v2429_v57, 4 }
0x10aa   : > { %v632_v38 = vpop.permute.xlu0 %631 }
0x10ab   : > { %653 = vst.msk [vmem:[#allocation2 + $0x18] sm:$0x1] %vm649_vm7, %v632_v38 }
0x10b2   : > { %v975_v39 = vpop.permute.xlu0 %974 }
0x10b3   : > { %995 = vst.msk [vmem:[#allocation2 + $0x1b] sm:$0x1] %vm649_vm7, %v975_v39  ;;  %v610_v39 = vrot.slane %v2429_v57, 1 }
0x10ba   : > { %v1317_v40 = vpop.permute.xlu0 %1316 }
0x10bb   : > { %1337 = vst.msk [vmem:[#allocation2 + $0x1e] sm:$0x1] %vm649_vm7, %v1317_v40  ;;  %v621_v40 = vperm.slane %v613_v36, 0  ;;  %v845_v36 = vrot.slane %v2468_v9, 7 }
0x10c2   : > { %v749_v41 = vpop.permute.xlu0 %748 }
0x10c3   : > { %768 = vst.msk [vmem:[#allocation2 + $0x21] sm:$0x1] %vm649_vm7, %v749_v41  ;;  %v618_v41 = vperm.slane %v610_v39, 0  ;;  %v853_v39 = vperm.slane %v845_v36, 0 }
0x10ca   : > { %v1091_v42 = vpop.permute.xlu0 %1090 }
0x10cb   : > { %1110 = vst.msk [vmem:[#allocation2 + $0x24] sm:$0x1] %vm649_vm7, %v1091_v42  ;;  %v956_v42 = vrot.slane %v2488_v37, 4 }
0x10d2   : > { %v865_v25 = vpop.permute.xlu0 %864 }
0x10d3   : > { %883 = vst.msk [vmem:[#allocation2 + $0x2a] sm:$0x1] %vm649_vm7, %v865_v25 }
0x10da   : > { %v1207_v27 = vpop.permute.xlu0 %1206 }
0x10db   : > { %1225 = vst.msk [vmem:[#allocation2 + $0x2d] sm:$0x1] %vm649_vm7, %v1207_v27  ;;  %v731_v27 = vrot.slane %v2443_v26, 7 }
0x10e2   : > { %v626_v43 = vpop.permute.xlu0 %625 }
0x10e3   : > { %650 = vst.msk [vmem:[#allocation2] sm:$0x1] %vm649_vm7, %v626_v43  ;;  %v964_v43 = vperm.slane %v956_v42, 0 }
0x1116   : > { %v1367_v45 = vpop.f32.mrf.mxu2 }
0x1117   : > { %v1370_v0 = vadd.f32 %v1367_v45, %v535_v44  ;;  %v739_v44 = vperm.slane %v731_v27, 0  ;;  %v1298_v45 = vrot.slane %v2528_v2, 4 }
0x1119   : > { %1912 = vtanh.f32 %v1370_v0  ;;  %v1736_v62 = vmul.f32 -1.442695, %v1370_v0 }
0x111b   : > { %1914 = vpow2.f32 %v1736_v62 }
0x111f   : > { %v1913_v46 = vpop.eup %1912 }
0x1120   : > { %1393 = vrot.lane.b32.xlu1 %v1913_v46, %s2127_s18  ;;  %v1306_v46 = vperm.slane %v1298_v45, 0 }
0x1121   : > { %v1915_v8 = vpop.eup %1914 }
0x1122   : > { %v1374_v10 = vadd.f32 1.0, %v1915_v8 }
0x1124   : > { %1916 = vrcp.f32 %v1374_v10  ;;  %v1386_v21 = vand.u32 2147483648, %v1374_v10  ;;  %vm1380_vm9 = vweird.f32 %v1374_v10  ;;  %v1384_v22 = vand.u32 2147483647, %v1374_v10 }
0x1126   : > { %v1387_v29 = vor.u32 1.1754944e-38, %v1386_v21  ;;  %vm1385_vm11 = vcmp.eq.f32.partialorder %v1384_v22, 8.507059e+37 }
0x1128   : > { %629 = vrot.lane.b32.xlu1 %v619_v48, %s2125_s6 }
0x112a   : > { %v1917_v14 = vpop.eup %1916 }
0x112b   : > { %v1376_v16 = vmul.f32 %v1917_v14, %v1374_v10  ;;  %vm1381_vm8 = vweird.f32 %v1917_v14 }
0x112c   : > { %vm1382_vm10 = vmor %vm1380_vm9, %vm1381_vm8 }
0x112d   : > { %v1377_v63 = vsub.f32 1.0, %v1376_v16 }
0x112f   : > { %v1378_v19 = vmul.f32 %v1917_v14, %v1377_v63 }
0x1130   : > { %972 = vrot.lane.b32.xlu1 %v962_v50, %s2125_s6  ;;  %v1071_v50 = vrot.slane %v2497_v7, 5 }
0x1131   : > { %v1379_v20 = vadd.f32 %v1917_v14, %v1378_v19 }
0x1133   : > { %v1383_v24 = vsel %vm1382_vm10, %v1917_v14, %v1379_v20  ;;  %v1072_v20 = vrot.slane %v2497_v7, 6 }
0x1134   : > { %v2598_v31 = vsel %vm1385_vm11, %v1387_v29, %v1383_v24  ;;  %v1302_v29 = vperm.slane %v2528_v2, 0 }
0x1135   : > { %v1080_v22 = vperm.slane %v1072_v20, 0 }
0x1138   : > { %1314 = vrot.lane.b32.xlu1 %v1304_v52, %s2125_s6  ;;  %v1079_v52 = vperm.slane %v1071_v50, 0  ;;  %v1187_v50 = vrot.slane %v2507_v32, 7 }
0x1140   : > { %746 = vrot.lane.b32.xlu1 %v735_v1, %s2125_s6  ;;  %v732_v1 = vperm.slane %v2443_v26, 0 }
0x1148   : > { %1088 = vrot.lane.b32.xlu1 %v1077_v55, %s2125_s6 }
0x1150   : > { %862 = vrot.lane.b32.xlu1 %v850_v58, %s2125_s6 }
0x1158   : > { %1204 = vrot.lane.b32.xlu1 %v1192_v60, %s2125_s6  ;;  %v1186_v60 = vrot.slane %v2507_v32, 6 }
0x1160   : > { %635 = vrot.lane.b32.xlu1 %v622_v6, %s2125_s6  ;;  %v1194_v6 = vperm.slane %v1186_v60, 0 }
0x1168   : > { %978 = vrot.lane.b32.xlu1 %v965_v3, %s2125_s6  ;;  %v624_v3 = vperm.slane %v616_v11, 0  ;;  %v1295_v11 = vrot.slane %v2528_v2, 1 }
0x1170   : > { %1320 = vrot.lane.b32.xlu1 %v1307_v5, %s2125_s6  ;;  %v1391_v5 = vmul.f32 %v2598_v31, %v2516_v53 }
0x1178   : > { %637 = vrot.lane.b32.xlu1 %v623_v13, %s2125_s6 }
0x1180   : > { %854 = vrot.lane.b32.xlu1 %v846_v15, %s2125_s6  ;;  %v730_v15 = vrot.slane %v2443_v26, 6 }
0x1182   : > { %v738_v17 = vperm.slane %v730_v15, 0 }
0x1188   : > { %980 = vrot.lane.b32.xlu1 %v966_v18, %s2125_s6  ;;  %v960_v18 = vperm.slane %v2488_v37, 0 }
0x1190   : > { %1196 = vrot.lane.b32.xlu1 %v1188_v23, %s2125_s6 }
0x1192   : > { %v1394_v30 = vpop.permute.xlu1 %1393 }
0x1193   : > { %v1396_v34 = vmul.f32 %v1394_v30, %v2598_v31 }
0x1195   : > { %1398 = vrot.lane.b32.xlu2 %v1396_v34, %s2125_s6 }
0x1198   : > { %1322 = vrot.lane.b32.xlu1 %v1308_v35, %s2125_s6  ;;  %v733_v35 = vperm.slane %v725_v33, 0 }
0x119a   : > { %v630_v38 = vpop.permute.xlu1 %629 }
0x119b   : > { %652 = vst.msk [vmem:[#allocation2 + $0x10] sm:$0x1] %vm649_vm7, %v630_v38 }
0x119d   : > { %633 = vrot.lane.b32.xlu2 %v621_v40, %s2125_s6  ;;  %v1067_v40 = vrot.slane %v2497_v7, 1 }
0x119f   : > { %v1075_v42 = vperm.slane %v1067_v40, 0 }
0x11a0   : > { %627 = vrot.lane.b32.xlu1 %v618_v41, %s2125_s6 }
0x11a2   : > { %v973_v25 = vpop.permute.xlu1 %972 }
0x11a3   : > { %994 = vst.msk [vmem:[#allocation2 + $0x13] sm:$0x1] %vm649_vm7, %v973_v25 }
0x11a5   : > { %976 = vrot.lane.b32.xlu2 %v964_v43, %s2125_s6 }
0x11a8   : > { %754 = vrot.lane.b32.xlu1 %v739_v44, %s2125_s6 }
0x11aa   : > { %v1315_v0 = vpop.permute.xlu1 %1314 }
0x11ab   : > { %1336 = vst.msk [vmem:[#allocation2 + $0x16] sm:$0x1] %vm649_vm7, %v1315_v0 }
0x11ad   : > { %1318 = vrot.lane.b32.xlu2 %v1306_v46, %s2125_s6 }
0x11b2   : > { %v747_v48 = vpop.permute.xlu1 %746 }
0x11b3   : > { %767 = vst.msk [vmem:[#allocation2 + $0x19] sm:$0x1] %vm649_vm7, %v747_v48 }
0x11b5   : > { %750 = vrot.lane.b32.xlu2 %v737_v49, %s2125_s6 }
0x11ba   : > { %v1089_v51 = vpop.permute.xlu1 %1088 }
0x11bb   : > { %1109 = vst.msk [vmem:[#allocation2 + $0x1c] sm:$0x1] %vm649_vm7, %v1089_v51  ;;  %v953_v51 = vrot.slane %v2488_v37, 1 }
0x11bd   : > { %1092 = vrot.lane.b32.xlu2 %v1079_v52, %s2125_s6  ;;  %v1195_v52 = vperm.slane %v1187_v50, 0 }
0x11c2   : > { %v863_v28 = vpop.permute.xlu1 %862 }
0x11c3   : > { %882 = vst.msk [vmem:[#allocation2 + $0x22] sm:$0x1] %vm649_vm7, %v863_v28  ;;  %v961_v28 = vperm.slane %v953_v51, 0 }
0x11c5   : > { %740 = vrot.lane.b32.xlu2 %v732_v1, %s2125_s6  ;;  %v839_v1 = vrot.slane %v2468_v9, 1 }
0x11ca   : > { %v1205_v55 = vpop.permute.xlu1 %1204 }
0x11cb   : > { %1224 = vst.msk [vmem:[#allocation2 + $0x25] sm:$0x1] %vm649_vm7, %v1205_v55 }
0x11cd   : > { %866 = vrot.lane.b32.xlu2 %v852_v56, %s2125_s6  ;;  %v1073_v56 = vrot.slane %v2497_v7, 7 }
0x11cf   : > { %v1081_v60 = vperm.slane %v1073_v56, 0 }
0x11d2   : > { %v636_v58 = vpop.permute.xlu1 %635 }
0x11d3   : > { %655 = vst.msk [vmem:[#allocation2 + $0x28] sm:$0x1] %vm649_vm7, %v636_v58  ;;  %v847_v58 = vperm.slane %v839_v1, 0 }
0x11d5   : > { %1082 = vrot.lane.b32.xlu2 %v1074_v59, %s2125_s6 }
0x11da   : > { %v979_v61 = vpop.permute.xlu1 %978 }
0x11db   : > { %997 = vst.msk [vmem:[#allocation2 + $0x2b] sm:$0x1] %vm649_vm7, %v979_v61  ;;  %v959_v61 = vrot.slane %v2488_v37, 7 }
0x11dd   : > { %1208 = vrot.lane.b32.xlu2 %v1194_v6, %s2125_s6 }
0x11e2   : > { %v1321_v62 = vpop.permute.xlu1 %1320 }
0x11e3   : > { %1339 = vst.msk [vmem:[#allocation2 + $0x2e] sm:$0x1] %vm649_vm7, %v1321_v62  ;;  %v967_v62 = vperm.slane %v959_v61, 0 }
0x11e5   : > { %639 = vrot.lane.b32.xlu2 %v624_v3, %s2125_s6  ;;  %v1303_v3 = vperm.slane %v1295_v11, 0 }
0x11ea   : > { %v638_v4 = vpop.permute.xlu1 %637 }
0x11eb   : > { %656 = vst.msk [vmem:[#allocation2 + $0x30] sm:$0x1] %vm649_vm7, %v638_v4 }
0x11ef   : > { %v1399_v8 = vpop.permute.xlu2 %1398 }
0x11f0   : > { %v1401_v10 = vadd.f32 %v1399_v8, %v1391_v5 }
0x11f2   : > { %1918 = vtanh.f32 %v1401_v10  ;;  %v855_v12 = vpop.permute.xlu1 %854 }
0x11f3   : > { %878 = vst.msk [vmem:[#allocation2 + $0x2] sm:$0x1] %vm649_vm7, %v855_v12  ;;  %v1181_v12 = vrot.slane %v2507_v32, 1  ;;  %v1465_v32 = vld [vmem:[#allocation9 + $0x8] sm:$0xff] }
0x11f7   : > { %v634_v13 = vpop.permute.xlu2 %633 }
0x11f8   : > { %v1919_v57 = vpop.eup %1918  ;;  %654 = vst.msk [vmem:[#allocation2 + $0x20] sm:$0x1] %vm649_vm7, %v634_v13 }
0x11f9   : > { %1404 = vrot.lane.b32.xlu0 %v1919_v57, %s2127_s18  ;;  %v1189_v57 = vperm.slane %v1181_v12, 0 }
0x11fa   : > { %v981_v14 = vpop.permute.xlu1 %980 }
0x11fb   : > { %998 = vst.msk [vmem:[#allocation2 + $0x33] sm:$0x1] %vm649_vm7, %v981_v14  ;;  %v1301_v14 = vrot.slane %v2528_v2, 7 }
0x11ff   : > { %v977_v16 = vpop.permute.xlu2 %976 }
0x1200   : > { %996 = vst.msk [vmem:[#allocation2 + $0x23] sm:$0x1] %vm649_vm7, %v977_v16  ;;  %v1309_v16 = vperm.slane %v1301_v14, 0 }
0x1201   : > { %752 = vrot.lane.b32.xlu0 %v738_v17, %s2125_s6 }
0x1202   : > { %v1197_v53 = vpop.permute.xlu1 %1196 }
0x1203   : > { %1220 = vst.msk [vmem:[#allocation2 + $0x5] sm:$0x1] %vm649_vm7, %v1197_v53  ;;  %v1467_v53 = vld [vmem:[#allocation9 + $0x18] sm:$0xff] }
0x1204   : > { %1508 = vmatpush.msra.mxu2 %v1467_v53  ;;  %1767 = vmatpush.msra.mxu3 %v1467_v53 }
0x1207   : > { %v1319_v63 = vpop.permute.xlu2 %1318 }
0x1208   : > { %1338 = vst.msk [vmem:[#allocation2 + $0x26] sm:$0x1] %vm649_vm7, %v1319_v63  ;;  %v1466_v63 = vld [vmem:[#allocation9 + $0x10] sm:$0xff] }
0x1209   : > { %968 = vrot.lane.b32.xlu0 %v960_v18, %s2125_s6  ;;  %1509 = vmatpush.msra.mxu2 %v1466_v63  ;;  %v1464_v18 = vld [vmem:[#allocation9] sm:$0xff] }
0x120a   : > { %v1323_v19 = vpop.permute.xlu1 %1322  ;;  %1768 = vmatpush.msra.mxu3 %v1466_v63 }
0x120b   : > { %1340 = vst.msk [vmem:[#allocation2 + $0x36] sm:$0x1] %vm649_vm7, %v1323_v19  ;;  %1510 = vmatpush.msra.mxu2 %v1465_v32 }
0x120c   : > { %1769 = vmatpush.msra.mxu3 %v1465_v32 }
0x120d   : > { %1511 = vmatpush.msra.mxu2 %v1464_v18 }
0x120e   : > { %1770 = vmatpush.msra.mxu3 %v1464_v18 }
0x120f   : > { %v751_v21 = vpop.permute.xlu2 %750 }
0x1210   : > { %769 = vst.msk [vmem:[#allocation2 + $0x29] sm:$0x1] %vm649_vm7, %v751_v21 }
0x1211   : > { %1094 = vrot.lane.b32.xlu0 %v1080_v22, %s2125_s6 }
0x1212   : > { %v628_v23 = vpop.permute.xlu1 %627 }
0x1213   : > { %651 = vst.msk [vmem:[#allocation2 + $0x8] sm:$0x1] %vm649_vm7, %v628_v23 }
0x1217   : > { %v1093_v24 = vpop.permute.xlu2 %1092 }
0x1218   : > { %1111 = vst.msk [vmem:[#allocation2 + $0x2c] sm:$0x1] %vm649_vm7, %v1093_v24 }
0x1219   : > { %1310 = vrot.lane.b32.xlu0 %v1302_v29, %s2125_s6 }
0x121a   : > { %v755_v30 = vpop.permute.xlu1 %754 }
0x121b   : > { %771 = vst.msk [vmem:[#allocation2 + $0x39] sm:$0x1] %vm649_vm7, %v755_v30 }
0x121f   : > { %v741_v34 = vpop.permute.xlu2 %740 }
0x1220   : > { %764 = vst.msk [vmem:[#allocation2 + $0x1] sm:$0x1] %vm649_vm7, %v741_v34 }
0x1221   : > { %742 = vrot.lane.b32.xlu0 %v733_v35, %s2125_s6 }
0x1227   : > { %v867_v38 = vpop.permute.xlu2 %866 }
0x1228   : > { %884 = vst.msk [vmem:[#allocation2 + $0x32] sm:$0x1] %vm649_vm7, %v867_v38 }
0x1229   : > { %868 = vrot.lane.b32.xlu0 %v853_v39, %s2125_s6 }
0x122f   : > { %v1083_v41 = vpop.permute.xlu2 %1082 }
0x1230   : > { %1106 = vst.msk [vmem:[#allocation2 + $0x4] sm:$0x1] %vm649_vm7, %v1083_v41 }
0x1231   : > { %1084 = vrot.lane.b32.xlu0 %v1075_v42, %s2125_s6 }
0x1237   : > { %v1209_v26 = vpop.permute.xlu2 %1208 }
0x1238   : > { %1226 = vst.msk [vmem:[#allocation2 + $0x35] sm:$0x1] %vm649_vm7, %v1209_v26 }
0x123f   : > { %v640_v25 = vpop.permute.xlu2 %639 }
0x1240   : > { %657 = vst.msk [vmem:[#allocation2 + $0x38] sm:$0x1] %vm649_vm7, %v640_v25 }
0x126b   : > { %v1405_v27 = vpop.permute.xlu0 %1404 }
0x126c   : > { %v1407_v43 = vmul.f32 %v1405_v27, %v2598_v31 }
0x126e   : > { %v1416_v44 = vperm.slane %v1407_v43, 0  ;;  %v1412_v45 = vrot.slane %v1407_v43, 4  ;;  %v1411_v0 = vrot.slane %v1407_v43, 3  ;;  %v1410_v48 = vrot.slane %v1407_v43, 2 }
0x126f   : > { %v1414_v55 = vrot.slane %v1407_v43, 6  ;;  %v1409_v9 = vrot.slane %v1407_v43, 1  ;;  %v1413_v4 = vrot.slane %v1407_v43, 5  ;;  %v1415_v37 = vrot.slane %v1407_v43, 7 }
0x1270   : > { %1424 = vrot.lane.b32.xlu2 %v1416_v44, %s2125_s6  ;;  %v1420_v46 = vperm.slane %v1412_v45, 0  ;;  %v1419_v47 = vperm.slane %v1411_v0, 0  ;;  %v1418_v31 = vperm.slane %v1410_v48, 0  ;;  %v1855_v0 = vld [vmem:[%s2772_s7] ss:$0 sm:$0xff] }
0x1271   : > { %v1422_v59 = vperm.slane %v1414_v55, 0  ;;  %v1417_v7 = vperm.slane %v1409_v9, 0  ;;  %v1421_v8 = vperm.slane %v1413_v4, 0  ;;  %v1423_v10 = vperm.slane %v1415_v37, 0 }
0x1272   : > { %1432 = vrot.lane.b32.xlu0 %v1420_v46, %s2125_s6  ;;  %1430 = vrot.lane.b32.xlu1 %v1419_v47, %s2125_s6 }
0x1273   : > { %v753_v49 = vpop.permute.xlu0 %752 }
0x1274   : > { %770 = vst.msk [vmem:[#allocation2 + $0x31] sm:$0x1] %vm649_vm7, %v753_v49 }
0x1278   : > { %1428 = vrot.lane.b32.xlu2 %v1418_v31, %s2125_s6 }
0x127a   : > { %1210 = vrot.lane.b32.xlu0 %v1195_v52, %s2125_s6  ;;  %970 = vrot.lane.b32.xlu1 %v961_v28, %s2125_s6 }
0x127b   : > { %v969_v54 = vpop.permute.xlu0 %968 }
0x127c   : > { %992 = vst.msk [vmem:[#allocation2 + $0x3] sm:$0x1] %vm649_vm7, %v969_v54 }
0x1280   : > { %856 = vrot.lane.b32.xlu2 %v847_v58, %s2125_s6 }
0x1282   : > { %1436 = vrot.lane.b32.xlu0 %v1422_v59, %s2125_s6  ;;  %1096 = vrot.lane.b32.xlu1 %v1081_v60, %s2125_s6 }
0x1283   : > { %v1095_v6 = vpop.permute.xlu0 %1094 }
0x1284   : > { %1112 = vst.msk [vmem:[#allocation2 + $0x34] sm:$0x1] %vm649_vm7, %v1095_v6 }
0x1288   : > { %982 = vrot.lane.b32.xlu2 %v967_v62, %s2125_s6 }
0x128a   : > { %1426 = vrot.lane.b32.xlu0 %v1417_v7, %s2125_s6  ;;  %1312 = vrot.lane.b32.xlu1 %v1303_v3, %s2125_s6 }
0x128b   : > { %v1311_v5 = vpop.permute.xlu0 %1310 }
0x128c   : > { %1334 = vst.msk [vmem:[#allocation2 + $0x6] sm:$0x1] %vm649_vm7, %v1311_v5 }
0x1290   : > { %1434 = vrot.lane.b32.xlu2 %v1421_v8, %s2125_s6 }
0x1292   : > { %1438 = vrot.lane.b32.xlu1 %v1423_v10, %s2125_s6 }
0x1293   : > { %v743_v13 = vpop.permute.xlu0 %742 }
0x1294   : > { %765 = vst.msk [vmem:[#allocation2 + $0x9] sm:$0x1] %vm649_vm7, %v743_v13 }
0x1298   : > { %1198 = vrot.lane.b32.xlu2 %v1189_v57, %s2125_s6 }
0x129b   : > { %v869_v15 = vpop.permute.xlu0 %868 }
0x129c   : > { %885 = vst.msk [vmem:[#allocation2 + $0x3a] sm:$0x1] %vm649_vm7, %v869_v15 }
0x12a0   : > { %1324 = vrot.lane.b32.xlu2 %v1309_v16, %s2125_s6 }
0x12a3   : > { %v1085_v17 = vpop.permute.xlu0 %1084 }
0x12a4   : > { %1107 = vst.msk [vmem:[#allocation2 + $0xc] sm:$0x1] %vm649_vm7, %v1085_v17 }
0x12ca   : > { %v1425_v2 = vpop.permute.xlu2 %1424 }
0x12cb   : > { %1448 = vst.msk [vmem:[#allocation2 + $0x7] sm:$0x1] %vm649_vm7, %v1425_v2 }
0x12d2   : > { %v1429_v19 = vpop.permute.xlu2 %1428  ;;  %v1456_v20 = vld [vmem:[#allocation2] sm:$0xff] }
0x12d3   : > { %1450 = vst.msk [vmem:[#allocation2 + $0x17] sm:$0x1] %vm649_vm7, %v1429_v19  ;;  %1737 = vmatmul.msk.f32.vlgmr.msra.gmra.mxu2 %vm543_vm0, %v1456_v20 }
0x12da   : > { %v857_v21 = vpop.permute.xlu2 %856  ;;  %v1458_v22 = vld [vmem:[#allocation2 + $0x10] sm:$0xff] }
0x12db   : > { %879 = vst.msk [vmem:[#allocation2 + $0xa] sm:$0x1] %vm649_vm7, %v857_v21  ;;  %1739 = vmatmul.msk.f32.vlgmr.msra.gmra.mxu3 %vm543_vm0, %v1458_v22 }
0x12e2   : > { %v983_v23 = vpop.permute.xlu2 %982 }
0x12e3   : > { %999 = vst.msk [vmem:[#allocation2 + $0x3b] sm:$0x1] %vm649_vm7, %v983_v23 }
0x12e4   : > { %v1433_v24 = vpop.permute.xlu0 %1432  ;;  %v1431_v29 = vpop.permute.xlu1 %1430 }
0x12e5   : > { %1452 = vst.msk [vmem:[#allocation2 + $0x27] sm:$0x1] %vm649_vm7, %v1433_v24 }
0x12e6   : > { %1451 = vst.msk [vmem:[#allocation2 + $0x1f] sm:$0x1] %vm649_vm7, %v1431_v29 }
0x12ea   : > { %v1435_v30 = vpop.permute.xlu2 %1434 }
0x12eb   : > { %1453 = vst.msk [vmem:[#allocation2 + $0x2f] sm:$0x1] %vm649_vm7, %v1435_v30 }
0x12ec   : > { %v1211_v33 = vpop.permute.xlu0 %1210  ;;  %v971_v34 = vpop.permute.xlu1 %970  ;;  %v1460_v40 = vld [vmem:[#allocation2 + $0x20] sm:$0xff] }
0x12ed   : > { %1227 = vst.msk [vmem:[#allocation2 + $0x3d] sm:$0x1] %vm649_vm7, %v1211_v33  ;;  %v1459_v35 = vld [vmem:[#allocation2 + $0x18] sm:$0xff] }
0x12ee   : > { %993 = vst.msk [vmem:[#allocation2 + $0xb] sm:$0x1] %vm649_vm7, %v971_v34  ;;  %1740 = vmatmul.msk.f32.gmra.mxu3 %vm543_vm0, %v1459_v35 }
0x12f2   : > { %v1199_v36 = vpop.permute.xlu2 %1198  ;;  %v1461_v25 = vld [vmem:[#allocation2 + $0x28] sm:$0xff] }
0x12f3   : > { %1221 = vst.msk [vmem:[#allocation2 + $0xd] sm:$0x1] %vm649_vm7, %v1199_v36 }
0x12f4   : > { %v1437_v38 = vpop.permute.xlu0 %1436  ;;  %v1097_v39 = vpop.permute.xlu1 %1096 }
0x12f5   : > { %1454 = vst.msk [vmem:[#allocation2 + $0x37] sm:$0x1] %vm649_vm7, %v1437_v38 }
0x12f6   : > { %1113 = vst.msk [vmem:[#allocation2 + $0x3c] sm:$0x1] %vm649_vm7, %v1097_v39  ;;  %1741 = vmatmul.msk.f32.gmra.mxu3 %vm543_vm0, %v1460_v40 }
0x12fa   : > { %v1325_v41 = vpop.permute.xlu2 %1324 }
0x12fb   : > { %1341 = vst.msk [vmem:[#allocation2 + $0x3e] sm:$0x1] %vm649_vm7, %v1325_v41 }
0x12fc   : > { %v1427_v42 = vpop.permute.xlu0 %1426  ;;  %v1313_v26 = vpop.permute.xlu1 %1312  ;;  %v1462_v44 = vld [vmem:[#allocation2 + $0x30] sm:$0xff] }
0x12fd   : > { %1449 = vst.msk [vmem:[#allocation2 + $0xf] sm:$0x1] %vm649_vm7, %v1427_v42 }
0x12fe   : > { %1335 = vst.msk [vmem:[#allocation2 + $0xe] sm:$0x1] %vm649_vm7, %v1313_v26  ;;  %1742 = vmatmul.msk.f32.gmra.mxu3 %vm543_vm0, %v1461_v25 }
0x1304   : > { %v1439_v27 = vpop.permute.xlu1 %1438 }
0x1305   : > { %1455 = vst.msk [vmem:[#allocation2 + $0x3f] sm:$0x1] %vm649_vm7, %v1439_v27  ;;  %v1457_v43 = vld [vmem:[#allocation2 + $0x8] sm:$0xff] }
0x1306   : > { %1738 = vmatmul.msk.f32.gmra.mxu2 %vm543_vm0, %v1457_v43  ;;  %1743 = vmatmul.msk.f32.gmra.mxu3 %vm543_vm0, %v1462_v44 }
0x130c   : > { %v1463_v45 = vld [vmem:[#allocation2 + $0x38] sm:$0xff] }
0x130e   : > { %1744 = vmatmul.msk.f32.gmra.mxu3 %vm543_vm0, %v1463_v45 }
0x1356   : > { %v1513_v46 = vpop.f32.mrf.mxu2 }
0x1357   : > { %v1514_v47 = vadd.f32 %v1855_v0, %v1513_v46 }
0x1359   : > { %1537 = vst [vmem:[%s410_s19] sm:$0xff] %v1514_v47 }
0x135e   : > { %v1519_v48 = vpop.f32.mrf.mxu3 }
0x135f   : > { %v1520_v49 = vadd.f32 %v1855_v0, %v1519_v48 }
0x1361   : > { %1539 = vst [vmem:[%s410_s19 + $0x10] sm:$0xff] %v1520_v49 }
0x1371   : > { %v1522_v50 = vpop.f32.mrf.mxu3 }
0x1372   : > { %v1523_v51 = vadd.f32 %v1855_v0, %v1522_v50 }
0x1374   : > { %1540 = vst [vmem:[%s410_s19 + $0x18] sm:$0xff] %v1523_v51 }
0x1379   : > { %v1525_v31 = vpop.f32.mrf.mxu3 }
0x137a   : > { %v1526_v52 = vadd.f32 %v1855_v0, %v1525_v31 }
0x137c   : > { %1541 = vst [vmem:[%s410_s19 + $0x20] sm:$0xff] %v1526_v52 }
0x1381   : > { %v1528_v28 = vpop.f32.mrf.mxu3 }
0x1382   : > { %v1529_v1 = vadd.f32 %v1855_v0, %v1528_v28 }
0x1384   : > { %1542 = vst [vmem:[%s410_s19 + $0x28] sm:$0xff] %v1529_v1 }
0x1389   : > { %v1516_v54 = vpop.f32.mrf.mxu2  ;;  %v1531_v55 = vpop.f32.mrf.mxu3 }
0x138a   : > { %v1517_v56 = vadd.f32 %v1855_v0, %v1516_v54  ;;  %v1532_v58 = vadd.f32 %v1855_v0, %v1531_v55 }
0x138c   : > { %1538 = vst [vmem:[%s410_s19 + $0x8] sm:$0xff] %v1517_v56 }
0x138d   : > { %1543 = vst [vmem:[%s410_s19 + $0x30] sm:$0xff] %v1532_v58 }
0x1391   : > { %v1534_v59 = vpop.f32.mrf.mxu3 }
0x1392   : > { %v1535_v60 = vadd.f32 %v1855_v0, %v1534_v59 }
0x1394   : > { %1544 = vst [vmem:[%s410_s19 + $0x38] sm:$0xff] %v1535_v60 }
0x1395   : > { %2067 = shalt.err (!%p2064_p11)
}
0x1396   : > { %s2128_s29 = smov 128   ;;  %s2129_s23 = smov 8  }
0x1397   : > { %1783 = dma.vmem_to_hbm [thread:$0]  (%p2244_p4), %s1559_s9, 1024, %s1561_s17, %s1546_s30, %s2128_s29, %s2128_s29, %s2129_s23  }
0x1398 PF: > { %s2795_s14 = sld [smem:[#allocation18_spill]]  ;;  %s1575_s10 = sand.u32 1, %s2106_s27  }
0x1399   : > { %s1576_s21 = scalar_lea.sflag [#allocation5], %s1575_s10 }
0x139e   : > { %p2796_p5 = scmp.ge.s32.totalorder %s2795_s14, 2 }
0x13a0   : > { %p1800_p13 = pnand %p2796_p5, %p2248_p6 }
0x13a2   : > { %p1801_p0 = pneg %p1800_p13 }
0x13a4   : > { %2101 = dma.done.wait (%p1801_p0), %s1576_s21, 1024  }
0x13a5   : > { %2103 = vsyncadd (%p1801_p0), %s1576_s21, 4294966272  ;;  %s2797_s30 = sld [smem:[#allocation19_spill]]  ;;  %s2800_s27 = smov %s2110_s28 }
0x13a6   : > { %s2798_s19 = sld [smem:[#allocation17_spill]] }
0x13a7   : > { %s2799_s29 = sld [smem:[#allocation20_spill]] }
0x13ab   : > { %p25_p2 = scmp.ge.s32.totalorder %s2797_s30, 4  }
0x13ac   : > { %s2801_s28 = smov %s2798_s19 }
0x13ad   :  { %27 = sbr.rel (!%p25_p2) target bundleno = 11 (0xb), region = 121 }
0x13b2   :  { %1582 = vsyncpa [#allocation4], 1 }
0x13b3   :  { %1584 = vsyncpa [#allocation4 + $0x1], 1 }
0x13b4   :  { %1585 = vsyncpa [#allocation7], 1 }
0x13b5   :  { %1587 = vsyncpa [#allocation7 + $0x1], 1 }
0x13b6   :  { %1588 = vsyncpa [#allocation10], 1 }
0x13b7   :  { %1589 = vsyncpa [#allocation5], 1 }
0x13b8   :  { %1591 = vsyncpa [#allocation5 + $0x1], 1 }

</bundles_post_ra>
